<compile_context>
chip_gen: v7x
topology: tpu7x:2x2x1
jax: 0.10.0
libtpu: 0.0.40
codegen_flags: <defaults>
</compile_context>

<pallas_src>
import functools
import math

import jax
import jax.numpy as jnp
from jax import lax
from jax.experimental import pallas as pl
from jax.experimental.pallas import tpu as pltpu

EPS = 1e-06
HIDDEN = 400        # hidden width of T in the reference module
HIDDEN_PAD = 512    # zero-padded to 4x128 lanes (exact)
NEG_INF = -1e30


def _round_up(x, m):
    return (x + m - 1) // m * m


def _use_bf16_elementwise():
    """bf16 bias/ReLU epilogue only on chips with a bf16 VALU (v6e / v7x)."""
    try:
        kind = jax.devices()[0].device_kind.lower()
    except Exception:
        return False
    return ("v6" in kind) or ("v7" in kind)


# ----------------------------------------------------------------------------- kernel

def _mine_kernel(ab_ref,
                 w1_ref, b1_ref, w2_ref, b2_ref, w3_ref, b3_ref, w4_ref, b4_ref,
                 sum_ref, m_ref, s_ref,
                 sum_acc, m_acc, s_acc,
                 *, tm, n, tiles_per_slice, needs_mask, bf16_ew):
    i = pl.program_id(1)           # reduction ("arbitrary") axis within this slice

    @pl.when(i == 0)
    def _init():
        sum_acc[...] = jnp.zeros_like(sum_acc)
        m_acc[...] = jnp.full((1, 1), NEG_INF, dtype=jnp.float32)
        s_acc[...] = jnp.zeros_like(s_acc)

    # Fused joint/marginal pass: (2, tm, d) block -> (2*tm, d) stream (leading-dim merge).
    d_in = ab_ref.shape[-1]
    a = ab_ref[...].reshape(2 * tm, d_in)            # bf16 already (cast in the wrapper)

    def layer(x, w_ref, b_ref):
        h = jnp.dot(x, w_ref[...], preferred_element_type=jnp.float32)   # f32 MXU acc
        if bf16_ew:
            # v6e/v7x: bias+ReLU in bf16 (half the VALU work), cast once after the dot.
            return jnp.maximum(h.astype(jnp.bfloat16) + b_ref[...], 0)
        # v5e (no bf16 VPU): keep elementwise math in f32, cast for the next dot.
        return jnp.maximum(h + b_ref[...], 0.0).astype(jnp.bfloat16)

    h = layer(a, w1_ref, b1_ref)
    h = layer(h, w2_ref, b2_ref)
    h = layer(h, w3_ref, b3_ref)
    # width-1 output layer off the MXU: VPU multiply + lane (XLU) reduction.
    t_all = jnp.sum(h.astype(jnp.float32) * w4_ref[...], axis=-1, keepdims=True) + b4_ref[...]

    t_joint = t_all[:tm, :]
    t_marg = t_all[tm:, :]

    def accumulate(valid):
        # running numerator of t = mean(T(x, z)) and streaming logsumexp over T(x, z_marg)
        if valid is None:
            sum_acc[...] += jnp.sum(t_joint, axis=0, keepdims=True)
            tile_max = jnp.max(t_marg, axis=0, keepdims=True)
        else:
            sum_acc[...] += jnp.sum(jnp.where(valid, t_joint, 0.0), axis=0, keepdims=True)
            tile_max = jnp.max(jnp.where(valid, t_marg, NEG_INF), axis=0, keepdims=True)
        m_old = m_acc[...]
        m_new = jnp.maximum(m_old, tile_max)
        p = jnp.exp(t_marg - m_new)
        if valid is not None:
            p = jnp.where(valid, p, 0.0)
        s_acc[...] = s_acc[...] * jnp.exp(m_old - m_new) + jnp.sum(p, axis=0, keepdims=True)
        m_acc[...] = m_new

    if needs_mask:
        g = pl.program_id(0) * tiles_per_slice + i      # global batch-tile index
        tile_end = (g + 1) * tm

        @pl.when(tile_end <= n)                          # common path: no masking work
        def _full():
            accumulate(None)

        @pl.when(tile_end > n)                           # only tiles overlapping padding
        def _edge():
            row = lax.broadcasted_iota(jnp.int32, (tm, 1), 0) + g * tm
            accumulate(row < n)
    else:
        accumulate(None)

    @pl.when(i == pl.num_programs(1) - 1)
    def _finalize():
        sum_ref[0] = sum_acc[...]
        m_ref[0] = m_acc[...]
        s_ref[0] = s_acc[...]


# ----------------------------------------------------------------------------- wrapper

def mine_forward_pallas(xz, xz_marg, packed_params, *, tm_max=512, bf16_ew=False):
    """packed_params = (w1,b1,w2,b2,w3,b3,w4_row,b4):
       w1 (d_in,512) bf16, w2/w3 (512,512) bf16, b1..b3 (1,512) (bf16 if bf16_ew else f32),
       w4_row (1,512) f32, b4 (1,1) f32 (zero-padded from HIDDEN=400)."""
    n, d_in = xz.shape
    tm = min(max(16, (tm_max // 16) * 16), _round_up(n, 16))   # multiple of 16 (bf16 tiling)
    num_tiles = -(-n // tm)
    num_slices = 2 if num_tiles >= 2 else 1     # use both TensorCores on v7x; loop elsewhere
    tiles_per_slice = -(-num_tiles // num_slices)
    n_pad = num_slices * tiles_per_slice * tm
    needs_mask = (n_pad != n)

    if needs_mask:
        pad = n_pad - n
        xz = jnp.pad(xz, ((0, pad), (0, 0)))
        xz_marg = jnp.pad(xz_marg, ((0, pad), (0, 0)))
    # single stacked bf16 input stream (no in-kernel concat, half the input HBM traffic)
    ab = jnp.stack([xz, xz_marg], axis=0).astype(jnp.bfloat16)

    w1, b1, w2, b2, w3, b3, w4_row, b4 = packed_params

    def full_spec(arr):
        # whole-array, grid-invariant block (weights/biases stay resident in VMEM)
        return pl.BlockSpec(arr.shape, lambda c, i: (0, 0))

    grid_spec = pltpu.PrefetchScalarGridSpec(
        num_scalar_prefetch=0,
        grid=(num_slices, tiles_per_slice),
        in_specs=[
            pl.BlockSpec((2, tm, d_in), lambda c, i: (0, c * tiles_per_slice + i, 0)),
            full_spec(w1), full_spec(b1),
            full_spec(w2), full_spec(b2),
            full_spec(w3), full_spec(b3),
            full_spec(w4_row), full_spec(b4),
        ],
        out_specs=(
            pl.BlockSpec((1, 1, 1), lambda c, i: (c, 0, 0)),
            pl.BlockSpec((1, 1, 1), lambda c, i: (c, 0, 0)),
            pl.BlockSpec((1, 1, 1), lambda c, i: (c, 0, 0)),
        ),
        scratch_shapes=[pltpu.VMEM((1, 1), jnp.float32)] * 3,   # sum_t, running max, running sum-exp
    )

    kernel = functools.partial(
        _mine_kernel, tm=tm, n=n, tiles_per_slice=tiles_per_slice,
        needs_mask=needs_mask, bf16_ew=bf16_ew)

    flops = 2 * (2 * n_pad) * (d_in * HIDDEN_PAD + 2 * HIDDEN_PAD * HIDDEN_PAD + HIDDEN_PAD)
    bytes_accessed = (ab.size * 2
                      + (w1.size + w2.size + w3.size) * 2
                      + (b1.size + b2.size + b3.size) * (2 if bf16_ew else 4)
                      + (w4_row.size + b4.size) * 4
                      + num_slices * 3 * 4)

    sum_p, m_p, s_p = pl.pallas_call(
        kernel,
        grid_spec=grid_spec,
        out_shape=(jax.ShapeDtypeStruct((num_slices, 1, 1), jnp.float32),) * 3,
        compiler_params=pltpu.CompilerParams(
            dimension_semantics=("parallel", "arbitrary"),
            vmem_limit_bytes=40 * 1024 * 1024),
        cost_estimate=pl.CostEstimate(
            flops=flops, transcendentals=2 * n_pad, bytes_accessed=bytes_accessed),
    )(ab, w1, b1, w2, b2, w3, b3, w4_row, b4)

    # merge per-slice partials in the wrapper: plain sum + numerically stable lse merge
    sum_p = sum_p.reshape(num_slices)
    m_p = m_p.reshape(num_slices)
    s_p = s_p.reshape(num_slices)
    m = jnp.max(m_p)
    s = jnp.sum(s_p * jnp.exp(m_p - m))
    second = m + jnp.log(s) - math.log(n)          # logsumexp(t_marg) - log(N)
    t_mean = jnp.sum(sum_p) / n
    loss = second - t_mean
    t_exp = jnp.exp(second)
    return loss, t_exp


# ----------------------------------------------------------------------------- params

def _init_linear(key, fan_in, fan_out):
    """PyTorch nn.Linear default init: U(-1/sqrt(fan_in), 1/sqrt(fan_in))."""
    kw, kb = jax.random.split(key)
    bound = 1.0 / math.sqrt(fan_in)
    w = jax.random.uniform(kw, (fan_in, fan_out), jnp.float32, -bound, bound)
    b = jax.random.uniform(kb, (fan_out,), jnp.float32, -bound, bound)
    return w, b


def _pack_params(raw, bf16_ew):
    """Zero-pad hidden width 400 -> 512 and cast matmul weights to bf16 (exact padding)."""
    w1, b1, w2, b2, w3, b3, w4, b4 = raw
    hp = HIDDEN_PAD
    pad_h = hp - HIDDEN
    bias_dt = jnp.bfloat16 if bf16_ew else jnp.float32
    w1p = jnp.pad(w1, ((0, 0), (0, pad_h))).astype(jnp.bfloat16)
    b1p = jnp.pad(b1, (0, pad_h)).reshape(1, hp).astype(bias_dt)
    w2p = jnp.pad(w2, ((0, pad_h), (0, pad_h))).astype(jnp.bfloat16)
    b2p = jnp.pad(b2, (0, pad_h)).reshape(1, hp).astype(bias_dt)
    w3p = jnp.pad(w3, ((0, pad_h), (0, pad_h))).astype(jnp.bfloat16)
    b3p = jnp.pad(b3, (0, pad_h)).reshape(1, hp).astype(bias_dt)
    w4row = jnp.pad(w4[:, 0], (0, pad_h)).reshape(1, hp).astype(jnp.float32)  # f32 VPU epilogue
    b4p = b4.reshape(1, 1).astype(jnp.float32)
    return (w1p, b1p, w2p, b2p, w3p, b3p, w4row, b4p)


class MinePallas:
    """JAX/Pallas port of Mine(T(x_dim, z_dim), loss='mine', alpha=0.01)."""

    def __init__(self, x_dim, z_dim, key, alpha=0.01, tm_max=512):
        self.alpha = alpha
        self.tm_max = tm_max
        self.bf16_ew = _use_bf16_elementwise()
        self.running_mean = jnp.float32(0.0)   # device-side EMA state (no host sync)
        d_in = x_dim + z_dim
        k1, k2, k3, k4 = jax.random.split(key, 4)
        w1, b1 = _init_linear(k1, d_in, HIDDEN)
        w2, b2 = _init_linear(k2, HIDDEN, HIDDEN)
        w3, b3 = _init_linear(k3, HIDDEN, HIDDEN)
        w4, b4 = _init_linear(k4, HIDDEN, 1)
        self.raw_params = (w1, b1, w2, b2, w3, b3, w4, b4)
        self.params = _pack_params(self.raw_params, self.bf16_ew)

    def forward(self, x, z, z_marg=None, perm_key=None):
        if z_marg is None:
            perm = jax.random.permutation(perm_key, x.shape[0])   # torch.randperm equivalent
            z_marg = z[perm]
        xz = jnp.concatenate([x, z], axis=1)            # glue: ConcatLayer(dim=1)
        xz_marg = jnp.concatenate([x, z_marg], axis=1)
        loss, t_exp = mine_forward_pallas(xz, xz_marg, self.params,
                                          tm_max=self.tm_max, bf16_ew=self.bf16_ew)
        # EMA running-mean bookkeeping (only affects backward in torch); kept on device.
        self.running_mean = jnp.where(
            self.running_mean == 0.0, t_exp,
            self.alpha * t_exp + (1.0 - self.alpha) * self.running_mean).astype(jnp.float32)
        # TODO(synk): EMALoss custom backward (gradient scaling by running_mean) is not ported;
        # forward value is exact.
        return loss


# ----------------------------------------------------------------------------- reference

def _reference_forward(xz, xz_marg, packed_params, bf16_ew):
    """Pure-jnp reference with the same arithmetic path (padded widths, bf16 matmuls)."""
    w1, b1, w2, b2, w3, b3, w4row, b4 = packed_params

    def layer(a, w, b):
        h = jnp.dot(a.astype(jnp.bfloat16), w, preferred_element_type=jnp.float32)
        if bf16_ew:
            return jnp.maximum(h.astype(jnp.bfloat16) + b, 0)
        return jnp.maximum(h + b, 0.0).astype(jnp.bfloat16)

    def mlp(a):
        h = layer(a, w1, b1)
        h = layer(h, w2, b2)
        h = layer(h, w3, b3)
        return jnp.sum(h.astype(jnp.float32) * w4row, axis=-1, keepdims=True) + b4

    n = xz.shape[0]
    t = jnp.mean(mlp(xz))
    t_marg = mlp(xz_marg)
    m = jnp.max(t_marg)
    second = m + jnp.log(jnp.sum(jnp.exp(t_marg - m))) - math.log(n)
    return -t + second


if __name__ == "__main__":
    key = jax.random.PRNGKey(0)
    k_params = jax.random.fold_in(key, 123)

    X_DIM, Z_DIM = 16, 16
    mine = MinePallas(X_DIM, Z_DIM, k_params, alpha=0.01, tm_max=16)

    def check(n, tm_max):
        kx, kz, kp = jax.random.split(jax.random.fold_in(key, n * 1000 + tm_max), 3)
        x = jax.random.normal(kx, (n, X_DIM), jnp.float32)
        z = jax.random.normal(kz, (n, Z_DIM), jnp.float32)
        mine.tm_max = tm_max
        loss = jax.block_until_ready(mine.forward(x, z, perm_key=kp))
        # validate against a pure-jnp reference of the same forward
        perm = jax.random.permutation(kp, n)
        xz = jnp.concatenate([x, z], axis=1)
        xz_marg = jnp.concatenate([x, z[perm]], axis=1)
        ref = _reference_forward(xz, xz_marg, mine.params, mine.bf16_ew)
        assert jnp.allclose(loss, ref, atol=2e-3, rtol=2e-3), (n, tm_max, loss, ref)

    check(24, 16)    # 2 slices, 1 tile each, edge-tile masking path
    check(32, 16)    # 2 slices, exact fit: unmasked fast path only
    check(24, 512)   # single slice / single tile (tm rounded up to 32)

    print("KERNEL_OK")
</pallas_src>

<mosaic_0001>
module attributes {stable_mosaic.version = 11 : i64} {
  func.func @_mine_kernel(%arg0: i32, %arg1: i32, %arg2: memref<2x16x32xbf16, #tpu.memory_space<vmem>>, %arg3: memref<32x512xbf16, #tpu.memory_space<vmem>>, %arg4: memref<1x512xf32, #tpu.memory_space<vmem>>, %arg5: memref<512x512xbf16, #tpu.memory_space<vmem>>, %arg6: memref<1x512xf32, #tpu.memory_space<vmem>>, %arg7: memref<512x512xbf16, #tpu.memory_space<vmem>>, %arg8: memref<1x512xf32, #tpu.memory_space<vmem>>, %arg9: memref<1x512xf32, #tpu.memory_space<vmem>>, %arg10: memref<1x1xf32, #tpu.memory_space<vmem>>, %arg11: memref<1x1x1xf32, #tpu.memory_space<vmem>>, %arg12: memref<1x1x1xf32, #tpu.memory_space<vmem>>, %arg13: memref<1x1x1xf32, #tpu.memory_space<vmem>>, %arg14: memref<1x1xf32, #tpu.memory_space<vmem>>, %arg15: memref<1x1xf32, #tpu.memory_space<vmem>>, %arg16: memref<1x1xf32, #tpu.memory_space<vmem>>) attributes {dimension_semantics = [#tpu.dimension_semantics<parallel>, #tpu.dimension_semantics<arbitrary>], iteration_bounds = array<i64: 2, 1>, scalar_prefetch = 0 : i64, scratch_operands = 3 : i64, tpu.core_type = #tpu.core_type<tc>, window_params = [{transform_indices = @transform_0, window_bounds = array<i64: 2, 16, 32>}, {pipeline_mode = #tpu.pipeline_mode<synchronous>, transform_indices = @transform_1, window_bounds = array<i64: 32, 512>}, {pipeline_mode = #tpu.pipeline_mode<synchronous>, transform_indices = @transform_2, window_bounds = array<i64: 1, 512>}, {pipeline_mode = #tpu.pipeline_mode<synchronous>, transform_indices = @transform_3, window_bounds = array<i64: 512, 512>}, {pipeline_mode = #tpu.pipeline_mode<synchronous>, transform_indices = @transform_4, window_bounds = array<i64: 1, 512>}, {pipeline_mode = #tpu.pipeline_mode<synchronous>, transform_indices = @transform_5, window_bounds = array<i64: 512, 512>}, {pipeline_mode = #tpu.pipeline_mode<synchronous>, transform_indices = @transform_6, window_bounds = array<i64: 1, 512>}, {pipeline_mode = #tpu.pipeline_mode<synchronous>, transform_indices = @transform_7, window_bounds = array<i64: 1, 512>}, {pipeline_mode = #tpu.pipeline_mode<synchronous>, transform_indices = @transform_8, window_bounds = array<i64: 1, 1>}, {transform_indices = @transform_9, window_bounds = array<i64: 1, 1, 1>}, {transform_indices = @transform_10, window_bounds = array<i64: 1, 1, 1>}, {transform_indices = @transform_11, window_bounds = array<i64: 1, 1, 1>}]} {
    %c0_i32 = arith.constant 0 : i32
    %0 = arith.cmpi eq, %arg1, %c0_i32 : i32
    %1 = arith.extui %0 : i1 to i32
    %c0_i32_0 = arith.constant 0 : i32
    %2 = arith.cmpi ne, %1, %c0_i32_0 : i32
    scf.if %2 {
      %cst_31 = arith.constant 0.000000e+00 : f32
      %53 = vector.broadcast %cst_31 : f32 to vector<1x1xf32>
      %c0_32 = arith.constant 0 : index
      %c0_33 = arith.constant 0 : index
      %54 = vector.load %arg14[%c0_32, %c0_33] : memref<1x1xf32, #tpu.memory_space<vmem>>, vector<1x1xf32>
      tpu.vector_store %arg14[%c0_32, %c0_33], %53 {strides = array<i32>} : memref<1x1xf32, #tpu.memory_space<vmem>>, vector<1x1xf32>,
      %cst_34 = arith.constant -1.000000e+30 : f32
      %55 = vector.broadcast %cst_34 : f32 to vector<1x1xf32>
      %c0_35 = arith.constant 0 : index
      %c0_36 = arith.constant 0 : index
      %56 = vector.load %arg15[%c0_35, %c0_36] : memref<1x1xf32, #tpu.memory_space<vmem>>, vector<1x1xf32>
      tpu.vector_store %arg15[%c0_35, %c0_36], %55 {strides = array<i32>} : memref<1x1xf32, #tpu.memory_space<vmem>>, vector<1x1xf32>,
      %cst_37 = arith.constant 0.000000e+00 : f32
      %57 = vector.broadcast %cst_37 : f32 to vector<1x1xf32>
      %c0_38 = arith.constant 0 : index
      %c0_39 = arith.constant 0 : index
      %58 = vector.load %arg16[%c0_38, %c0_39] : memref<1x1xf32, #tpu.memory_space<vmem>>, vector<1x1xf32>
      tpu.vector_store %arg16[%c0_38, %c0_39], %57 {strides = array<i32>} : memref<1x1xf32, #tpu.memory_space<vmem>>, vector<1x1xf32>,
    } else {
    }
    %c0 = arith.constant 0 : index
    %c0_1 = arith.constant 0 : index
    %c0_2 = arith.constant 0 : index
    %3 = vector.load %arg2[%c0, %c0_1, %c0_2] : memref<2x16x32xbf16, #tpu.memory_space<vmem>>, vector<2x16x32xbf16>
    %4 = vector.shape_cast %3 : vector<2x16x32xbf16> to vector<32x32xbf16>
    %c0_3 = arith.constant 0 : index
    %c0_4 = arith.constant 0 : index
    %5 = vector.load %arg3[%c0_3, %c0_4] : memref<32x512xbf16, #tpu.memory_space<vmem>>, vector<32x512xbf16>
    %cst = arith.constant dense<0.000000e+00> : vector<32x512xf32>
    %6 = tpu.matmul %4, %5, %cst {dimension_numbers = #tpu.dot_dimension_numbers<[1], [0], [0], [1], [0, 0, 1, 1], [], []>} : vector<32x32xbf16>, vector<32x512xbf16>, vector<32x512xf32> -> vector<32x512xf32>
    %c0_5 = arith.constant 0 : index
    %c0_6 = arith.constant 0 : index
    %7 = vector.load %arg4[%c0_5, %c0_6] : memref<1x512xf32, #tpu.memory_space<vmem>>, vector<1x512xf32>
    %8 = vector.broadcast %7 : vector<1x512xf32> to vector<32x512xf32>
    %9 = arith.addf %6, %8 : vector<32x512xf32>
    %cst_7 = arith.constant 0.000000e+00 : f32
    %10 = vector.broadcast %cst_7 : f32 to vector<32x512xf32>
    %11 = arith.maximumf %9, %10 : vector<32x512xf32>
    %12 = arith.truncf %11 : vector<32x512xf32> to vector<32x512xbf16>
    %c0_8 = arith.constant 0 : index
    %c0_9 = arith.constant 0 : index
    %13 = vector.load %arg5[%c0_8, %c0_9] : memref<512x512xbf16, #tpu.memory_space<vmem>>, vector<512x512xbf16>
    %cst_10 = arith.constant dense<0.000000e+00> : vector<32x512xf32>
    %14 = tpu.matmul %12, %13, %cst_10 {dimension_numbers = #tpu.dot_dimension_numbers<[1], [0], [0], [1], [0, 0, 1, 1], [], []>} : vector<32x512xbf16>, vector<512x512xbf16>, vector<32x512xf32> -> vector<32x512xf32>
    %c0_11 = arith.constant 0 : index
    %c0_12 = arith.constant 0 : index
    %15 = vector.load %arg6[%c0_11, %c0_12] : memref<1x512xf32, #tpu.memory_space<vmem>>, vector<1x512xf32>
    %16 = vector.broadcast %15 : vector<1x512xf32> to vector<32x512xf32>
    %17 = arith.addf %14, %16 : vector<32x512xf32>
    %cst_13 = arith.constant 0.000000e+00 : f32
    %18 = vector.broadcast %cst_13 : f32 to vector<32x512xf32>
    %19 = arith.maximumf %17, %18 : vector<32x512xf32>
    %20 = arith.truncf %19 : vector<32x512xf32> to vector<32x512xbf16>
    %c0_14 = arith.constant 0 : index
    %c0_15 = arith.constant 0 : index
    %21 = vector.load %arg7[%c0_14, %c0_15] : memref<512x512xbf16, #tpu.memory_space<vmem>>, vector<512x512xbf16>
    %cst_16 = arith.constant dense<0.000000e+00> : vector<32x512xf32>
    %22 = tpu.matmul %20, %21, %cst_16 {dimension_numbers = #tpu.dot_dimension_numbers<[1], [0], [0], [1], [0, 0, 1, 1], [], []>} : vector<32x512xbf16>, vector<512x512xbf16>, vector<32x512xf32> -> vector<32x512xf32>
    %c0_17 = arith.constant 0 : index
    %c0_18 = arith.constant 0 : index
    %23 = vector.load %arg8[%c0_17, %c0_18] : memref<1x512xf32, #tpu.memory_space<vmem>>, vector<1x512xf32>
    %24 = vector.broadcast %23 : vector<1x512xf32> to vector<32x512xf32>
    %25 = arith.addf %22, %24 : vector<32x512xf32>
    %cst_19 = arith.constant 0.000000e+00 : f32
    %26 = vector.broadcast %cst_19 : f32 to vector<32x512xf32>
    %27 = arith.maximumf %25, %26 : vector<32x512xf32>
    %28 = arith.truncf %27 : vector<32x512xf32> to vector<32x512xbf16>
    %29 = arith.extf %28 : vector<32x512xbf16> to vector<32x512xf32>
    %c0_20 = arith.constant 0 : index
    %c0_21 = arith.constant 0 : index
    %30 = vector.load %arg9[%c0_20, %c0_21] : memref<1x512xf32, #tpu.memory_space<vmem>>, vector<1x512xf32>
    %31 = vector.broadcast %30 : vector<1x512xf32> to vector<32x512xf32>
    %32 = arith.mulf %29, %31 : vector<32x512xf32>
    %cst_22 = arith.constant dense<0.000000e+00> : vector<32xf32>
    %33 = vector.multi_reduction <add>, %32, %cst_22 [1] : vector<32x512xf32> to vector<32xf32>
    %34 = vector.shape_cast %33 : vector<32xf32> to vector<32x1xf32>
    %c0_23 = arith.constant 0 : index
    %c0_24 = arith.constant 0 : index
    %35 = vector.load %arg10[%c0_23, %c0_24] : memref<1x1xf32, #tpu.memory_space<vmem>>, vector<1x1xf32>
    %36 = vector.broadcast %35 : vector<1x1xf32> to vector<32x1xf32>
    %37 = arith.addf %34, %36 : vector<32x1xf32>
    %38 = vector.extract_strided_slice %37 {offsets = [0, 0], sizes = [16, 1], strides = [1, 1]} : vector<32x1xf32> to vector<16x1xf32>
    %39 = vector.extract_strided_slice %37 {offsets = [16, 0], sizes = [16, 1], strides = [1, 1]} : vector<32x1xf32> to vector<16x1xf32>
    %c1_i32 = arith.constant 1 : i32
    %40 = arith.muli %arg0, %c1_i32 : i32
    %41 = arith.addi %40, %arg1 : i32
    %c1_i32_25 = arith.constant 1 : i32
    %42 = arith.addi %41, %c1_i32_25 : i32
    %c16_i32 = arith.constant 16 : i32
    %43 = arith.muli %42, %c16_i32 : i32
    %c24_i32 = arith.constant 24 : i32
    %44 = arith.cmpi sle, %43, %c24_i32 : i32
    %45 = arith.extui %44 : i1 to i32
    %c0_i32_26 = arith.constant 0 : i32
    %46 = arith.cmpi ne, %45, %c0_i32_26 : i32
    scf.if %46 {
      %c0_31 = arith.constant 0 : index
      %c0_32 = arith.constant 0 : index
      %53 = vector.load %arg14[%c0_31, %c0_32] : memref<1x1xf32, #tpu.memory_space<vmem>>, vector<1x1xf32>
      %cst_33 = arith.constant dense<0.000000e+00> : vector<1xf32>
      %54 = vector.multi_reduction <add>, %38, %cst_33 [0] : vector<16x1xf32> to vector<1xf32>
      %55 = vector.shape_cast %54 : vector<1xf32> to vector<1x1xf32>
      %56 = arith.addf %53, %55 : vector<1x1xf32>
      %c0_34 = arith.constant 0 : index
      %c0_35 = arith.constant 0 : index
      %57 = vector.load %arg14[%c0_34, %c0_35] : memref<1x1xf32, #tpu.memory_space<vmem>>, vector<1x1xf32>
      tpu.vector_store %arg14[%c0_34, %c0_35], %56 {strides = array<i32>} : memref<1x1xf32, #tpu.memory_space<vmem>>, vector<1x1xf32>,
      %cst_36 = arith.constant dense<0xFF800000> : vector<1xf32>
      %58 = vector.multi_reduction <maximumf>, %39, %cst_36 [0] : vector<16x1xf32> to vector<1xf32>
      %59 = vector.shape_cast %58 : vector<1xf32> to vector<1x1xf32>
      %c0_37 = arith.constant 0 : index
      %c0_38 = arith.constant 0 : index
      %60 = vector.load %arg15[%c0_37, %c0_38] : memref<1x1xf32, #tpu.memory_space<vmem>>, vector<1x1xf32>
      %61 = arith.maximumf %60, %59 : vector<1x1xf32>
      %62 = vector.broadcast %61 : vector<1x1xf32> to vector<16x1xf32>
      %63 = arith.subf %39, %62 : vector<16x1xf32>
      %64 = math.exp %63 : vector<16x1xf32>
      %c0_39 = arith.constant 0 : index
      %c0_40 = arith.constant 0 : index
      %65 = vector.load %arg16[%c0_39, %c0_40] : memref<1x1xf32, #tpu.memory_space<vmem>>, vector<1x1xf32>
      %66 = arith.subf %60, %61 : vector<1x1xf32>
      %67 = math.exp %66 : vector<1x1xf32>
      %68 = arith.mulf %65, %67 : vector<1x1xf32>
      %cst_41 = arith.constant dense<0.000000e+00> : vector<1xf32>
      %69 = vector.multi_reduction <add>, %64, %cst_41 [0] : vector<16x1xf32> to vector<1xf32>
      %70 = vector.shape_cast %69 : vector<1xf32> to vector<1x1xf32>
      %71 = arith.addf %68, %70 : vector<1x1xf32>
      %c0_42 = arith.constant 0 : index
      %c0_43 = arith.constant 0 : index
      %72 = vector.load %arg16[%c0_42, %c0_43] : memref<1x1xf32, #tpu.memory_space<vmem>>, vector<1x1xf32>
      tpu.vector_store %arg16[%c0_42, %c0_43], %71 {strides = array<i32>} : memref<1x1xf32, #tpu.memory_space<vmem>>, vector<1x1xf32>,
      %c0_44 = arith.constant 0 : index
      %c0_45 = arith.constant 0 : index
      %73 = vector.load %arg15[%c0_44, %c0_45] : memref<1x1xf32, #tpu.memory_space<vmem>>, vector<1x1xf32>
      tpu.vector_store %arg15[%c0_44, %c0_45], %61 {strides = array<i32>} : memref<1x1xf32, #tpu.memory_space<vmem>>, vector<1x1xf32>,
    } else {
    }
    %c24_i32_27 = arith.constant 24 : i32
    %47 = arith.cmpi sgt, %43, %c24_i32_27 : i32
    %48 = arith.extui %47 : i1 to i32
    %c0_i32_28 = arith.constant 0 : i32
    %49 = arith.cmpi ne, %48, %c0_i32_28 : i32
    scf.if %49 {
      %53 = tpu.iota {dimensions = array<i32: 0>} : vector<16x1xi32>
      %c16_i32_31 = arith.constant 16 : i32
      %54 = arith.muli %41, %c16_i32_31 : i32
      %55 = vector.broadcast %54 : i32 to vector<16x1xi32>
      %56 = arith.addi %53, %55 : vector<16x1xi32>
      %c24_i32_32 = arith.constant 24 : i32
      %57 = vector.broadcast %c24_i32_32 : i32 to vector<16x1xi32>
      %58 = arith.cmpi slt, %56, %57 : vector<16x1xi32>
      %c0_33 = arith.constant 0 : index
      %c0_34 = arith.constant 0 : index
      %59 = vector.load %arg14[%c0_33, %c0_34] : memref<1x1xf32, #tpu.memory_space<vmem>>, vector<1x1xf32>
      %cst_35 = arith.constant 0.000000e+00 : f32
      %60 = vector.broadcast %cst_35 : f32 to vector<16x1xf32>
      %61 = arith.select %58, %38, %60 : vector<16x1xi1>, vector<16x1xf32>
      %cst_36 = arith.constant dense<0.000000e+00> : vector<1xf32>
      %62 = vector.multi_reduction <add>, %61, %cst_36 [0] : vector<16x1xf32> to vector<1xf32>
      %63 = vector.shape_cast %62 : vector<1xf32> to vector<1x1xf32>
      %64 = arith.addf %59, %63 : vector<1x1xf32>
      %c0_37 = arith.constant 0 : index
      %c0_38 = arith.constant 0 : index
      %65 = vector.load %arg14[%c0_37, %c0_38] : memref<1x1xf32, #tpu.memory_space<vmem>>, vector<1x1xf32>
      tpu.vector_store %arg14[%c0_37, %c0_38], %64 {strides = array<i32>} : memref<1x1xf32, #tpu.memory_space<vmem>>, vector<1x1xf32>,
      %cst_39 = arith.constant -1.000000e+30 : f32
      %66 = vector.broadcast %cst_39 : f32 to vector<16x1xf32>
      %67 = arith.select %58, %39, %66 : vector<16x1xi1>, vector<16x1xf32>
      %cst_40 = arith.constant dense<0xFF800000> : vector<1xf32>
      %68 = vector.multi_reduction <maximumf>, %67, %cst_40 [0] : vector<16x1xf32> to vector<1xf32>
      %69 = vector.shape_cast %68 : vector<1xf32> to vector<1x1xf32>
      %c0_41 = arith.constant 0 : index
      %c0_42 = arith.constant 0 : index
      %70 = vector.load %arg15[%c0_41, %c0_42] : memref<1x1xf32, #tpu.memory_space<vmem>>, vector<1x1xf32>
      %71 = arith.maximumf %70, %69 : vector<1x1xf32>
      %72 = vector.broadcast %71 : vector<1x1xf32> to vector<16x1xf32>
      %73 = arith.subf %39, %72 : vector<16x1xf32>
      %74 = math.exp %73 : vector<16x1xf32>
      %cst_43 = arith.constant 0.000000e+00 : f32
      %75 = vector.broadcast %cst_43 : f32 to vector<16x1xf32>
      %76 = arith.select %58, %74, %75 : vector<16x1xi1>, vector<16x1xf32>
      %c0_44 = arith.constant 0 : index
      %c0_45 = arith.constant 0 : index
      %77 = vector.load %arg16[%c0_44, %c0_45] : memref<1x1xf32, #tpu.memory_space<vmem>>, vector<1x1xf32>
      %78 = arith.subf %70, %71 : vector<1x1xf32>
      %79 = math.exp %78 : vector<1x1xf32>
      %80 = arith.mulf %77, %79 : vector<1x1xf32>
      %cst_46 = arith.constant dense<0.000000e+00> : vector<1xf32>
      %81 = vector.multi_reduction <add>, %76, %cst_46 [0] : vector<16x1xf32> to vector<1xf32>
      %82 = vector.shape_cast %81 : vector<1xf32> to vector<1x1xf32>
      %83 = arith.addf %80, %82 : vector<1x1xf32>
      %c0_47 = arith.constant 0 : index
      %c0_48 = arith.constant 0 : index
      %84 = vector.load %arg16[%c0_47, %c0_48] : memref<1x1xf32, #tpu.memory_space<vmem>>, vector<1x1xf32>
      tpu.vector_store %arg16[%c0_47, %c0_48], %83 {strides = array<i32>} : memref<1x1xf32, #tpu.memory_space<vmem>>, vector<1x1xf32>,
      %c0_49 = arith.constant 0 : index
      %c0_50 = arith.constant 0 : index
      %85 = vector.load %arg15[%c0_49, %c0_50] : memref<1x1xf32, #tpu.memory_space<vmem>>, vector<1x1xf32>
      tpu.vector_store %arg15[%c0_49, %c0_50], %71 {strides = array<i32>} : memref<1x1xf32, #tpu.memory_space<vmem>>, vector<1x1xf32>,
    } else {
    }
    %c0_i32_29 = arith.constant 0 : i32
    %50 = arith.cmpi eq, %arg1, %c0_i32_29 : i32
    %51 = arith.extui %50 : i1 to i32
    %c0_i32_30 = arith.constant 0 : i32
    %52 = arith.cmpi ne, %51, %c0_i32_30 : i32
    scf.if %52 {
      %c0_31 = arith.constant 0 : index
      %c0_32 = arith.constant 0 : index
      %53 = vector.load %arg14[%c0_31, %c0_32] : memref<1x1xf32, #tpu.memory_space<vmem>>, vector<1x1xf32>
      %c0_33 = arith.constant 0 : index
      %c0_34 = arith.constant 0 : index
      %c0_35 = arith.constant 0 : index
      %54 = vector.load %arg11[%c0_33, %c0_34, %c0_35] : memref<1x1x1xf32, #tpu.memory_space<vmem>>, vector<1x1x1xf32>
      %55 = vector.shape_cast %54 : vector<1x1x1xf32> to vector<1x1xf32>
      %56 = vector.shape_cast %53 : vector<1x1xf32> to vector<1x1x1xf32>
      tpu.vector_store %arg11[%c0_33, %c0_34, %c0_35], %56 {strides = array<i32>} : memref<1x1x1xf32, #tpu.memory_space<vmem>>, vector<1x1x1xf32>,
      %c0_36 = arith.constant 0 : index
      %c0_37 = arith.constant 0 : index
      %57 = vector.load %arg15[%c0_36, %c0_37] : memref<1x1xf32, #tpu.memory_space<vmem>>, vector<1x1xf32>
      %c0_38 = arith.constant 0 : index
      %c0_39 = arith.constant 0 : index
      %c0_40 = arith.constant 0 : index
      %58 = vector.load %arg12[%c0_38, %c0_39, %c0_40] : memref<1x1x1xf32, #tpu.memory_space<vmem>>, vector<1x1x1xf32>
      %59 = vector.shape_cast %58 : vector<1x1x1xf32> to vector<1x1xf32>
      %60 = vector.shape_cast %57 : vector<1x1xf32> to vector<1x1x1xf32>
      tpu.vector_store %arg12[%c0_38, %c0_39, %c0_40], %60 {strides = array<i32>} : memref<1x1x1xf32, #tpu.memory_space<vmem>>, vector<1x1x1xf32>,
      %c0_41 = arith.constant 0 : index
      %c0_42 = arith.constant 0 : index
      %61 = vector.load %arg16[%c0_41, %c0_42] : memref<1x1xf32, #tpu.memory_space<vmem>>, vector<1x1xf32>
      %c0_43 = arith.constant 0 : index
      %c0_44 = arith.constant 0 : index
      %c0_45 = arith.constant 0 : index
      %62 = vector.load %arg13[%c0_43, %c0_44, %c0_45] : memref<1x1x1xf32, #tpu.memory_space<vmem>>, vector<1x1x1xf32>
      %63 = vector.shape_cast %62 : vector<1x1x1xf32> to vector<1x1xf32>
      %64 = vector.shape_cast %61 : vector<1x1xf32> to vector<1x1x1xf32>
      tpu.vector_store %arg13[%c0_43, %c0_44, %c0_45], %64 {strides = array<i32>} : memref<1x1x1xf32, #tpu.memory_space<vmem>>, vector<1x1x1xf32>,
    } else {
    }
    return
  }
  func.func @transform_0(%arg0: i32, %arg1: i32) -> (i32, i32, i32) {
    %c1_i32 = arith.constant 1 : i32
    %0 = arith.muli %arg0, %c1_i32 : i32
    %1 = arith.addi %0, %arg1 : i32
    %c0_i32 = arith.constant 0 : i32
    %c0_i32_0 = arith.constant 0 : i32
    %c0_i32_1 = arith.constant 0 : i32
    return %c0_i32, %1, %c0_i32_0 : i32, i32, i32
  }
  func.func @transform_1(%arg0: i32, %arg1: i32) -> (i32, i32) {
    %c0_i32 = arith.constant 0 : i32
    %c0_i32_0 = arith.constant 0 : i32
    %c0_i32_1 = arith.constant 0 : i32
    return %c0_i32, %c0_i32_0 : i32, i32
  }
  func.func @transform_2(%arg0: i32, %arg1: i32) -> (i32, i32) {
    %c0_i32 = arith.constant 0 : i32
    %c0_i32_0 = arith.constant 0 : i32
    %c0_i32_1 = arith.constant 0 : i32
    return %c0_i32, %c0_i32_0 : i32, i32
  }
  func.func @transform_3(%arg0: i32, %arg1: i32) -> (i32, i32) {
    %c0_i32 = arith.constant 0 : i32
    %c0_i32_0 = arith.constant 0 : i32
    %c0_i32_1 = arith.constant 0 : i32
    return %c0_i32, %c0_i32_0 : i32, i32
  }
  func.func @transform_4(%arg0: i32, %arg1: i32) -> (i32, i32) {
    %c0_i32 = arith.constant 0 : i32
    %c0_i32_0 = arith.constant 0 : i32
    %c0_i32_1 = arith.constant 0 : i32
    return %c0_i32, %c0_i32_0 : i32, i32
  }
  func.func @transform_5(%arg0: i32, %arg1: i32) -> (i32, i32) {
    %c0_i32 = arith.constant 0 : i32
    %c0_i32_0 = arith.constant 0 : i32
    %c0_i32_1 = arith.constant 0 : i32
    return %c0_i32, %c0_i32_0 : i32, i32
  }
  func.func @transform_6(%arg0: i32, %arg1: i32) -> (i32, i32) {
    %c0_i32 = arith.constant 0 : i32
    %c0_i32_0 = arith.constant 0 : i32
    %c0_i32_1 = arith.constant 0 : i32
    return %c0_i32, %c0_i32_0 : i32, i32
  }
  func.func @transform_7(%arg0: i32, %arg1: i32) -> (i32, i32) {
    %c0_i32 = arith.constant 0 : i32
    %c0_i32_0 = arith.constant 0 : i32
    %c0_i32_1 = arith.constant 0 : i32
    return %c0_i32, %c0_i32_0 : i32, i32
  }
  func.func @transform_8(%arg0: i32, %arg1: i32) -> (i32, i32) {
    %c0_i32 = arith.constant 0 : i32
    %c0_i32_0 = arith.constant 0 : i32
    %c0_i32_1 = arith.constant 0 : i32
    return %c0_i32, %c0_i32_0 : i32, i32
  }
  func.func @transform_9(%arg0: i32, %arg1: i32) -> (i32, i32, i32) {
    %c0_i32 = arith.constant 0 : i32
    %c0_i32_0 = arith.constant 0 : i32
    %c0_i32_1 = arith.constant 0 : i32
    return %arg0, %c0_i32, %c0_i32_0 : i32, i32, i32
  }
  func.func @transform_10(%arg0: i32, %arg1: i32) -> (i32, i32, i32) {
    %c0_i32 = arith.constant 0 : i32
    %c0_i32_0 = arith.constant 0 : i32
    %c0_i32_1 = arith.constant 0 : i32
    return %arg0, %c0_i32, %c0_i32_0 : i32, i32, i32
  }
  func.func @transform_11(%arg0: i32, %arg1: i32) -> (i32, i32, i32) {
    %c0_i32 = arith.constant 0 : i32
    %c0_i32_0 = arith.constant 0 : i32
    %c0_i32_1 = arith.constant 0 : i32
    return %arg0, %c0_i32, %c0_i32_0 : i32, i32, i32
  }
}

</mosaic_0001>

<bundles_post_ra>
// kernel: tpu_custom_call.1
= control target key start
LH: loop header
LB: loop body
LE: loop exit
PB: predicated region body
PF: predicated region fallthrough
CT: control target
= control target key end

     0   :  { %s4653_s0 = inlined_call_operand.hbm [shape: bf16[2,32,32], index: 0, kind: input, shape index: {}]   ;;  %s4654_s1 = inlined_call_operand.hbm [shape: bf16[32,512], index: 1, kind: input, shape index: {}]   ;;  %s4655_s2 = inlined_call_operand.vmem [shape: f32[1,512], index: 2, kind: input, shape index: {}]   ;;  %s4656_s3 = inlined_call_operand.hbm [shape: bf16[512,512], index: 3, kind: input, shape index: {}]   ;;  %s4657_s4 = inlined_call_operand.vmem [shape: f32[1,512], index: 4, kind: input, shape index: {}]   ;;  %s4658_s5 = inlined_call_operand.hbm [shape: bf16[512,512], index: 5, kind: input, shape index: {}]   ;;  %s4659_s6 = inlined_call_operand.vmem [shape: f32[1,512], index: 6, kind: input, shape index: {}]   ;;  %s4660_s7 = inlined_call_operand.vmem [shape: f32[1,512], index: 7, kind: input, shape index: {}]   ;;  %s4661_s8 = inlined_call_operand.<no memory space> [shape: f32[1,1], index: 8, kind: input, shape index: {}]   ;;  %s4662_s9 = inlined_call_operand.vmem [shape: f32[2,1,1], index: 9, kind: output, shape index: {0}]   ;;  %s4663_s10 = inlined_call_operand.vmem [shape: f32[2,1,1], index: 10, kind: output, shape index: {1}]   ;;  %s4664_s11 = inlined_call_operand.vmem [shape: f32[2,1,1], index: 11, kind: output, shape index: {2}]  }
   0x1   :  { %4671 = sst [smem:[#allocation21_spill]] %s4654_s1  ;;  %v17_v0 = vstv %s4661_s8 }
   0x2   :  { %4672 = sst [smem:[#allocation22_spill]] %s4655_s2  ;;  %18 = vst [vmem:[#allocation5] sm:$0x1] %v17_v0 }
   0x3   :  { %4673 = sst [smem:[#allocation23_spill]] %s4657_s4 }
   0x4   :  { %4674 = sst [smem:[#allocation24_spill]] %s4659_s6 }
   0x5   :  { %4675 = sst [smem:[#allocation25_spill]] %s4660_s7 }
   0x6   :  { %19 = vsyncpa [#allocation7], 0 }
   0x7   :  { %21 = vsyncpa [#allocation7 + $0x1], 0 }
   0x8   :  { %22 = vsyncpa [#allocation9], 0 }
   0x9   :  { %23 = vsyncpa [#allocation12], 0  ;;  %s4257_s19 = smov 0   ;;  %s4259_s20 = smov 0  }
   0xa   :  { %s4261_s21 = smov 0   ;;  %s4263_s22 = smov 0  }
   0xb   :  { %s4265_s23 = smov 0   ;;  %s4267_s24 = smov 0  }
   0xc LB: > { %s3166_s8 = sadd.s32 4294967295, %s4178_s24   ;;  %s41_s25 = sadd.s32 1, %s4174_s23  ;;  %s4178_s24 = sphi %s4267_s24, %s29_s24   ;;  %s4174_s23 = sphi %s4265_s23, %s4699_s23   ;;  %s4170_s22 = sphi %s4263_s22, %s4698_s22   ;;  %s4166_s21 = sphi %s4261_s21, %s4697_s21   ;;  %s4162_s20 = sphi %s4259_s20, %s4696_s20   ;;  %s4158_s19 = sphi %s4257_s19, %s4695_s19  }
   0xd   : > { %p43_p0 = scmp.ge.s32.totalorder %s41_s25, 2  ;;  %s50_s26 = sadd.s32 1, %s4166_s21 }
   0xe   : > { %p57_p1 = scmp.ne.s32.totalorder %s4166_s21, %s4162_s20  ;;  %p58_p2 = scmp.eq.s32.totalorder %s4178_s24, 0 }
   0xf   : > { %s4701_s25 = smov (%p43_p0, %s41_s25), 0  ;;  %p63_p4 = scmp.ne.s32.totalorder %s4162_s20, %s4158_s19 }
  0x10   : > { %4676 = sst [smem:[#allocation19_spill]] %s4701_s25  ;;  %p4293_p3 = por %p58_p2, %p57_p1 }
  0x11   : > { %s47_s28 = ssub.s32 %s4174_s23, %s4701_s25  ;;  %p4300_p5 = scmp.eq.s32.totalorder %s3166_s8, 0 }
  0x12   : > { %s4677_s27 = scalar_select %p4293_p3, 1, 0 }
  0x13   : > { %s4678_s29 = scalar_select %p4300_p5, 1, 0 }
  0x14   : > { %p48_p6 = scmp.eq.s32.totalorder %s47_s28, 0  ;;  %p3168_p7 = scmp.ge.s32.totalorder %s4178_s24, 1 }
  0x15   : > { %p4307_p8 = por %p4300_p5, %p63_p4  ;;  %p320_p9 = scmp.lt.s32.totalorder %s4178_s24, 3 }
  0x16   : > { %s4313_s12 = scalar_select %p48_p6, %s4166_s21, %s50_s26  }
  0x17   : > { %s4679_s30 = scalar_select %p4307_p8, 1, 0 }
  0x18   : > { %4680 = sst [smem:[#allocation20_spill]] %s4313_s12  ;;  %p4315_p10 = pnand %p3168_p7, %p320_p9 }
  0x19   : > { %s4180_s14 = smov [#allocation8]   ;;  %s4181_s17 = smov [#allocation10]  }
  0x1a   : > { %s4681_s13 = scalar_select %p4315_p10, 1, 0 }
  0x1b   : > { %p3548_p11 = pneg %p4315_p10  ;;  %s332_s15 = sshll.u32 %s4180_s14, 4  ;;  %s333_s15 = int_to_ptr.vmem [resolvable:$true] %s332_s15 }
  0x1c   : > { %s348_s18 = sshll.u32 %s4181_s17, 4  ;;  %s4683_s1 = sld [smem:[#allocation21_spill]]  ;;  %s4327_s18 = int_to_ptr.vmem [resolvable:$true] %s348_s18 }
  0x1d   : > { %p4323_p12 = pnand %p3548_p11, %p4300_p5 }
  0x1f   : > { %p4337_p0 = pneg %p4323_p12 }
  0x22   : > { %s4036_s26 = scalar_lea.hbm %s4683_s1, 1024 }
  0x23   : > { %p4037_p13 = scmp.ne.s32.totalorder %s4683_s1, %s4036_s26  ;;  %p4043_p4 = scmp.lt.u32.totalorder %s4036_s26, %s4683_s1 }
  0x25   : > { %p4039_p1 = pnand %p4337_p0, %p4037_p13 }
  0x27   : > { %p4040_p2 = pneg %p4039_p1 }
  0x29   : > { %p4045_p6 = pnand %p4043_p4, %p4040_p2 }
  0x2b   : > { %4048 = shalt.err (!%p4045_p6)
}
  0x2c   : > { %s4049_s19 = scalar_lea.vmem %s333_s15, 1024  ;;  %p4057_p5 = scmp.lt.s32.totalorder %s333_s15, %s333_s15 }
  0x2d   : > { %p4050_p7 = scmp.ne.s32.totalorder %s333_s15, %s4049_s19  ;;  %p4058_p8 = scmp.lt.s32.totalorder %s4049_s19, %s4049_s19 }
  0x2f   : > { %p4052_p9 = pnand %p4050_p7, %p4337_p0  ;;  %p4059_p10 = por %p4058_p8, %p4057_p5 }
  0x31   : > { %p4053_p11 = pneg %p4052_p9 }
  0x33   : > { %p4060_p3 = pnand %p4059_p10, %p4053_p11 }
  0x35   : > { %4063 = shalt.err (!%p4060_p3)
}
  0x36   : > { %s4182_s25 = smov 256   ;;  %s4183_s8 = smov 16  }
  0x37   : > { %3551 = dma.hbm_to_vmem [thread:$0]  (!%p4323_p12), %s4683_s1, 1024, %s333_s15, [#allocation9], %s4182_s25, %s4182_s25, %s4183_s8  }
  0x38   : > { %s4064_s7 = scalar_lea.hbm %s4656_s3, 16384 }
  0x39   : > { %p4065_p3 = scmp.ne.s32.totalorder %s4656_s3, %s4064_s7  ;;  %p4071_p10 = scmp.lt.u32.totalorder %s4064_s7, %s4656_s3 }
  0x3b   : > { %p4067_p5 = pnand %p4065_p3, %p4337_p0 }
  0x3d   : > { %p4068_p8 = pneg %p4067_p5 }
  0x3f   : > { %p4073_p13 = pnand %p4071_p10, %p4068_p8 }
  0x41   : > { %4076 = shalt.err (!%p4073_p13)
}
  0x42   : > { %s4077_s15 = scalar_lea.vmem %s4327_s18, 16384  ;;  %p4085_p6 = scmp.lt.s32.totalorder %s4327_s18, %s4327_s18 }
  0x43   : > { %p4078_p1 = scmp.ne.s32.totalorder %s4327_s18, %s4077_s15  ;;  %p4086_p7 = scmp.lt.s32.totalorder %s4077_s15, %s4077_s15 }
  0x45   : > { %p4080_p2 = pnand %p4078_p1, %p4337_p0  ;;  %p4087_p9 = por %p4086_p7, %p4085_p6 }
  0x47   : > { %p4081_p4 = pneg %p4080_p2 }
  0x49   : > { %p4088_p11 = pnand %p4087_p9, %p4081_p4 }
  0x4b   : > { %4091 = shalt.err (!%p4088_p11)
}
  0x4c   : > { %3554 = dma.hbm_to_vmem [thread:$0]  (!%p4323_p12), %s4656_s3, 16384, %s4327_s18, [#allocation9], %s4182_s25, %s4182_s25, %s4183_s8  }
  0x4d   : > { %s4184_s6 = smov [#allocation11]   ;;  %s4092_s28 = scalar_lea.hbm %s4658_s5, 16384 }
  0x4e   : > { %s364_s7 = sshll.u32 %s4184_s6, 4  ;;  %p4093_p3 = scmp.ne.s32.totalorder %s4658_s5, %s4092_s28  ;;  %s365_s7 = int_to_ptr.vmem [resolvable:$true] %s364_s7 }
  0x4f   : > { %p4099_p10 = scmp.lt.u32.totalorder %s4092_s28, %s4658_s5 }
  0x50   : > { %p4095_p5 = pnand %p4093_p3, %p4337_p0 }
  0x52   : > { %p4096_p8 = pneg %p4095_p5 }
  0x54   : > { %p4101_p13 = pnand %p4099_p10, %p4096_p8 }
  0x56   : > { %4104 = shalt.err (!%p4101_p13)
}
  0x57   : > { %s4105_s18 = scalar_lea.vmem %s365_s7, 16384  ;;  %p4113_p6 = scmp.lt.s32.totalorder %s365_s7, %s365_s7 }
  0x58   : > { %p4106_p1 = scmp.ne.s32.totalorder %s365_s7, %s4105_s18  ;;  %p4114_p7 = scmp.lt.s32.totalorder %s4105_s18, %s4105_s18 }
  0x5a   : > { %p4108_p2 = pnand %p4106_p1, %p4337_p0  ;;  %p4115_p9 = por %p4114_p7, %p4113_p6 }
  0x5c   : > { %p4109_p4 = pneg %p4108_p2 }
  0x5e   : > { %p4116_p11 = pnand %p4115_p9, %p4109_p4 }
  0x60   : > { %4119 = shalt.err (!%p4116_p11)
}
  0x61   : > { %3557 = dma.hbm_to_vmem [thread:$0]  (!%p4323_p12), %s4658_s5, 16384, %s365_s7, [#allocation12], %s4182_s25, %s4182_s25, %s4183_s8  }
  0x62   : > { %p3172_p3 = scmp.ge.s32.totalorder %s4178_s24, 2 }
  0x64   : > { %383 = sbr.rel (%p3172_p3) target bundleno = 122 (0x7a), region = 48 }
  0x6b   : > { %s387_s14 = sand.u32 1, %s4166_s21   ;;  %s3460_s4 = sshll.u32 %s4174_s23, 7 }
  0x6c   : > { %s3173_s16 = sshll.u32 %s387_s14, 4  ;;  %s398_s26 = scalar_lea.hbm %s4653_s0, %s3460_s4 }
  0x6d   : > { %p4685_p0 = scmp.ne.s32.totalorder %s4677_s27, 0  ;;  %s391_s8 = scalar_lea.vmem [#allocation6], %s3173_s16 }
  0x6e   : > { %s411_s7 = sshll.u32 %s391_s8, 4  ;;  %s4185_s17 = smov 256   ;;  %s412_s7 = int_to_ptr.vmem [resolvable:$true] %s411_s7 }
  0x6f   : > { %s3533_s25 = scalar_select %p4685_p0, [#allocation0], [#allocation15] }
  0x70   : > { %3534 = sst [smem:[#allocation14]] (%p4685_p0), %s4185_s17  ;;  %s4186_s19 = smov 128  }
  0x71   : > { %s403_s28 = sld [smem:[%s3533_s25]]   ;;  %s4187_s15 = smov 2  }
  0x72   : > { %3535 = sst [smem:[#allocation14 + $0x1]] (%p4685_p0), %s4186_s19  ;;  %s4188_s18 = smov 64  }
  0x73   : > { %3536 = sst [smem:[#allocation14 + $0x2]] (%p4685_p0), %s4187_s15  ;;  %s4189_s2 = smov 4  }
  0x74   : > { %3537 = sst [smem:[#allocation14 + $0x3]] (%p4685_p0), %s4188_s18  ;;  %s388_s16 = scalar_lea.sflag [#allocation7], %s387_s14 }
  0x75   : > { %3538 = sst [smem:[#allocation14 + $0x4]] (%p4685_p0), %s4188_s18  ;;  %s4190_s6 = smov [#allocation13]  }
  0x76   : > { %3539 = sst [smem:[#allocation14 + $0x5]] (%p4685_p0), %s4189_s2 }
  0x77   : > { %s3176_s1 = sshll.u32 %s403_s28, 26 }
  0x78   : > { %s3177_s4 = sadd.s32 134217728, %s3176_s1 }
  0x79   : > { %3540 = dma.general (%p4685_p0), %s398_s26, 256, %s412_s7, %s388_s16, %s4190_s6, [#allocation14], %s3177_s4, 0  }
  0x7a PF: > { %p4686_p12 = scmp.ne.s32.totalorder %s4681_s13, 0 }
  0x7b   : > { %s438_s12 = sand.u32 (!%p4686_p12), 1, %s4162_s20   ;;  %p4687_p5 = scmp.ne.s32.totalorder (!%p4686_p12), %s4679_s30, 0 }
  0x7c   : > { %436 = sbr.rel (%p4686_p12) target bundleno = 1231 (0x4cf), region = 56  ;;  %s4428_s25 = sshll.u32 (!%p4686_p12), %s438_s12, 4 }
  0x7d   : > { %s439_s8 = scalar_lea.sflag (!%p4686_p12), [#allocation7], %s438_s12  ;;  %s442_s28 = scalar_lea.vmem (!%p4686_p12), [#allocation6], %s4428_s25 }
  0x83   : > { %4145 = dma.done.wait (%p4687_p5), %s439_s8, 256  }
  0x84   : > { %4147 = vsyncadd (%p4687_p5), %s439_s8, 4294967040  ;;  %p4688_p8 = scmp.ne.s32.totalorder %s4678_s29, 0 }
  0x86   : > { %4149 = dma.done.wait (%p4688_p8), [#allocation9], 17408  }
  0x87   : > { %4151 = vsyncadd (%p4688_p8), [#allocation9], 4294949888 }
  0x88   : > { %4153 = dma.done.wait (%p4688_p8), [#allocation12], 16384  }
  0x89   : > { %4155 = vsyncadd (%p4688_p8), [#allocation12], 4294950912  ;;  %vm513_vm0 = vcmask 0   ;;  %v4191_v1 = vmov 0.0   ;;  %v4192_v2 = vmov -1e+30  }
  0x8a   : > { %514 = vst.msk [vmem:[#allocation2] sm:$0x1] %vm513_vm0, %v4191_v1  ;;  %515 = vst.msk [vmem:[#allocation3] sm:$0x1] %vm513_vm0, %v4192_v2  ;;  %p499_p10 = scmp.lt.s32.totalorder %s4170_s22, 1  ;;  %v4193_v3 = vmov 0  }
  0x8b   : > { %516 = vst.msk [vmem:[#allocation4] sm:$0x1] %vm513_vm0, %v4191_v1  ;;  %640 = vmatprep.mubr.bf16.mxu0 %v4193_v3  ;;  %693 = vmatprep.mubr.bf16.mxu1 %v4193_v3  ;;  %v3626_v4 = vld [vmem:[#allocation8 + $0x4] ss:$16 sps:$4 sm:$0xff]   ;;  %v3628_v5 = vld [vmem:[#allocation8] ss:$16 sps:$4 sm:$0xff]  }
  0x8c   : > { %s4448_s27 = scalar_select %p499_p10, %s4170_s22, 1  ;;  %608 = vmatprep.subr.bf16.mxu0 %v3626_v4  ;;  %v3629_v6 = vld [vmem:[#allocation8 + $0x24] ss:$16 sps:$4 sm:$0xff]   ;;  %v3631_v7 = vld [vmem:[#allocation8 + $0x20] ss:$16 sps:$4 sm:$0xff]   ;;  %vm601_vm1 = vcmask 261120  }
  0x8d   : > { %609 = vmatpush1.bf16.msra.mxu0 %v3628_v5  ;;  %v3632_v8 = vld [vmem:[%s442_s28] sm:$0xff]   ;;  %v3634_v9 = vld [vmem:[#allocation8 + $0xc] ss:$16 sps:$4 sm:$0xff]   ;;  %v3636_v10 = vld [vmem:[#allocation8 + $0x8] ss:$16 sps:$4 sm:$0xff]   ;;  %s4689_s2 = sld [smem:[#allocation22_spill]] }
  0x8e   : > { %s501_s13 = scalar_lea.vmem %s4662_s9, %s4448_s27  ;;  %s504_s7 = scalar_lea.vmem %s4663_s10, %s4448_s27  ;;  %610 = vmatprep.subr.bf16.mxu0 %v3629_v6  ;;  %v3637_v11 = vld [vmem:[#allocation8 + $0x2c] ss:$16 sps:$4 sm:$0xff]   ;;  %661 = vmatprep.subr.bf16.mxu1 %v3634_v9  ;;  %v3639_v12 = vld [vmem:[#allocation8 + $0x28] ss:$16 sps:$4 sm:$0xff]   ;;  %v3640_v13 = vld [vmem:[#allocation10] ss:$16 sps:$4 sm:$0xff]  }
  0x8f   : > { %s507_s15 = scalar_lea.vmem %s4664_s11, %s4448_s27  ;;  %662 = vmatpush1.bf16.msra.mxu1 %v3636_v10  ;;  %v3642_v14 = vld [vmem:[#allocation10 + $0x4] ss:$16 sps:$4 sm:$0xff]   ;;  %v3645_v15 = vld [vmem:[#allocation10 + $0xc] ss:$16 sps:$4 sm:$0xff]   ;;  %v3646_v16 = vld [vmem:[#allocation10 + $0x20] ss:$16 sps:$4 sm:$0xff]  }
  0x90   : > { %663 = vmatprep.subr.bf16.mxu1 %v3637_v11  ;;  %v3648_v17 = vld [vmem:[#allocation10 + $0x24] ss:$16 sps:$4 sm:$0xff]   ;;  %v3643_v18 = vld [vmem:[#allocation10 + $0x8] ss:$16 sps:$4 sm:$0xff]   ;;  %v3651_v19 = vld [vmem:[#allocation10 + $0x2c] ss:$16 sps:$4 sm:$0xff]  }
  0x91   : > { %611 = vmatpush1.bf16.msra.mxu0 %v3631_v7  ;;  %v3654_v20 = vld [vmem:[#allocation10 + $0x44] ss:$16 sps:$4 sm:$0xff]   ;;  %v3633_v21 = vld [vmem:[%s442_s28 + $0x8] sm:$0xff]   ;;  %v3652_v22 = vld [vmem:[#allocation10 + $0x40] ss:$16 sps:$4 sm:$0xff]   ;;  %s4690_s6 = sld [smem:[#allocation23_spill]] }
  0x92   : > { %1528 = vmatprep.subr.bf16.mxu0 %v3642_v14  ;;  %v3649_v23 = vld [vmem:[#allocation10 + $0x28] ss:$16 sps:$4 sm:$0xff]   ;;  %v3660_v24 = vld [vmem:[#allocation10 + $0x64] ss:$16 sps:$4 sm:$0xff]   ;;  %v3657_v25 = vld [vmem:[#allocation10 + $0x4c] ss:$16 sps:$4 sm:$0xff]  }
  0x93   : > { %664 = vmatpush1.bf16.msra.mxu1 %v3639_v12  ;;  %v3658_v26 = vld [vmem:[#allocation10 + $0x60] ss:$16 sps:$4 sm:$0xff]   ;;  %v3655_v27 = vld [vmem:[#allocation10 + $0x48] ss:$16 sps:$4 sm:$0xff]   ;;  %v3666_v28 = vld [vmem:[#allocation10 + $0x84] ss:$16 sps:$4 sm:$0xff]  }
  0x94   : > { %3193 = vmatmul.mubr.msk.bf16.vlgmr.msra.gmra.mrb[0].mxu0 %vm601_vm1, %v3632_v8  ;;  %1634 = vmatprep.subr.bf16.mxu1 %v3645_v15  ;;  %v3663_v29 = vld [vmem:[#allocation10 + $0x6c] ss:$16 sps:$4 sm:$0xff]   ;;  %v3664_v30 = vld [vmem:[#allocation10 + $0x80] ss:$16 sps:$4 sm:$0xff]   ;;  %v3661_v31 = vld [vmem:[#allocation10 + $0x68] ss:$16 sps:$4 sm:$0xff]  }
  0x95   : > { %650 = vmatprep.mubr.bf16.mxu0 %v4193_v3  ;;  %1529 = vmatpush1.bf16.msra.mxu0 %v3640_v13  ;;  %v3672_v32 = vld [vmem:[#allocation10 + $0xa4] ss:$16 sps:$4 sm:$0xff]   ;;  %v3669_v33 = vld [vmem:[#allocation10 + $0x8c] ss:$16 sps:$4 sm:$0xff]   ;;  %v3670_v34 = vld [vmem:[#allocation10 + $0xa0] ss:$16 sps:$4 sm:$0xff]  }
  0x96   : > { %1530 = vmatprep.subr.bf16.mxu0 %v3648_v17  ;;  %3195 = vmatmul.mubr.msk.bf16.vlgmr.msra.gmra.mrb[0].mxu1 %vm601_vm1, %v3632_v8  ;;  %v3667_v35 = vld [vmem:[#allocation10 + $0x88] ss:$16 sps:$4 sm:$0xff]   ;;  %v3678_v36 = vld [vmem:[#allocation10 + $0xc4] ss:$16 sps:$4 sm:$0xff]   ;;  %v3675_v37 = vld [vmem:[#allocation10 + $0xac] ss:$16 sps:$4 sm:$0xff]  }
  0x97   : > { %703 = vmatprep.mubr.bf16.mxu1 %v4193_v3  ;;  %1635 = vmatpush1.bf16.msra.mxu1 %v3643_v18  ;;  %v3676_v38 = vld [vmem:[#allocation10 + $0xc0] ss:$16 sps:$4 sm:$0xff]   ;;  %v3673_v39 = vld [vmem:[#allocation10 + $0xa8] ss:$16 sps:$4 sm:$0xff]   ;;  %v3684_v40 = vld [vmem:[#allocation10 + $0xe4] ss:$16 sps:$4 sm:$0xff]  }
  0x98   : > { %1636 = vmatprep.subr.bf16.mxu1 %v3651_v19  ;;  %v3681_v41 = vld [vmem:[#allocation10 + $0xcc] ss:$16 sps:$4 sm:$0xff]   ;;  %v3682_v42 = vld [vmem:[#allocation10 + $0xe0] ss:$16 sps:$4 sm:$0xff]   ;;  %v3679_v43 = vld [vmem:[#allocation10 + $0xc8] ss:$16 sps:$4 sm:$0xff]  }
  0x99   : > { %1531 = vmatpush1.bf16.msra.mxu0 %v3646_v16  ;;  %v3690_v44 = vld [vmem:[#allocation10 + $0x104] ss:$16 sps:$4 sm:$0xff]   ;;  %v3687_v45 = vld [vmem:[#allocation10 + $0xec] ss:$16 sps:$4 sm:$0xff]   ;;  %v3688_v46 = vld [vmem:[#allocation10 + $0x100] ss:$16 sps:$4 sm:$0xff]   ;;  %v531_v16 = vlaneseq }
  0x9a   : > { %1532 = vmatprep.subr.bf16.mxu0 %v3654_v20  ;;  %v3685_v47 = vld [vmem:[#allocation10 + $0xe8] ss:$16 sps:$4 sm:$0xff]   ;;  %v3696_v48 = vld [vmem:[#allocation10 + $0x124] ss:$16 sps:$4 sm:$0xff]   ;;  %v3693_v49 = vld [vmem:[#allocation10 + $0x10c] ss:$16 sps:$4 sm:$0xff]  }
  0x9b   : > { %1637 = vmatpush1.bf16.msra.mxu1 %v3649_v23  ;;  %v3694_v50 = vld [vmem:[#allocation10 + $0x120] ss:$16 sps:$4 sm:$0xff]   ;;  %v3691_v51 = vld [vmem:[#allocation10 + $0x108] ss:$16 sps:$4 sm:$0xff]   ;;  %v3699_v52 = vld [vmem:[#allocation10 + $0x12c] ss:$16 sps:$4 sm:$0xff]  }
  0x9c   : > { %3194 = vmatmul.mubr.msk.bf16.gmra.mrb[4].mxu0 %vm601_vm1, %v3633_v21  ;;  %1638 = vmatprep.subr.bf16.mxu1 %v3657_v25  ;;  %v3702_v53 = vld [vmem:[#allocation10 + $0x144] ss:$16 sps:$4 sm:$0xff]   ;;  %v3700_v54 = vld [vmem:[#allocation10 + $0x140] ss:$16 sps:$4 sm:$0xff]   ;;  %v3697_v55 = vld [vmem:[#allocation10 + $0x128] ss:$16 sps:$4 sm:$0xff]  }
  0x9d   : > { %1533 = vmatpush1.bf16.msra.mxu0 %v3652_v22  ;;  %v3708_v56 = vld [vmem:[#allocation10 + $0x164] ss:$16 sps:$4 sm:$0xff]   ;;  %v3705_v57 = vld [vmem:[#allocation10 + $0x14c] ss:$16 sps:$4 sm:$0xff]   ;;  %v3706_v58 = vld [vmem:[#allocation10 + $0x160] ss:$16 sps:$4 sm:$0xff]  }
  0x9e   : > { %1534 = vmatprep.subr.bf16.mxu0 %v3660_v24  ;;  %3196 = vmatmul.mubr.msk.bf16.gmra.mrb[4].mxu1 %vm601_vm1, %v3633_v21  ;;  %v3703_v59 = vld [vmem:[#allocation10 + $0x148] ss:$16 sps:$4 sm:$0xff]   ;;  %v3714_v60 = vld [vmem:[#allocation10 + $0x184] ss:$16 sps:$4 sm:$0xff]   ;;  %v3711_v61 = vld [vmem:[#allocation10 + $0x16c] ss:$16 sps:$4 sm:$0xff]  }
  0x9f   : > { %1639 = vmatpush1.bf16.msra.mxu1 %v3655_v27  ;;  %v3712_v62 = vld [vmem:[#allocation10 + $0x180] ss:$16 sps:$4 sm:$0xff]   ;;  %v3709_v63 = vld [vmem:[#allocation10 + $0x168] ss:$16 sps:$4 sm:$0xff]   ;;  %v3720_v0 = vld [vmem:[#allocation10 + $0x1a4] ss:$16 sps:$4 sm:$0xff]  }
  0xa0   : > { %1640 = vmatprep.subr.bf16.mxu1 %v3663_v29  ;;  %v3717_v1 = vld [vmem:[#allocation10 + $0x18c] ss:$16 sps:$4 sm:$0xff]   ;;  %v3718_v2 = vld [vmem:[#allocation10 + $0x1a0] ss:$16 sps:$4 sm:$0xff]   ;;  %v3715_v3 = vld [vmem:[#allocation10 + $0x188] ss:$16 sps:$4 sm:$0xff]  }
  0xa1   : > { %1535 = vmatpush1.bf16.msra.mxu0 %v3658_v26  ;;  %v3723_v4 = vld [vmem:[#allocation10 + $0x1ac] ss:$16 sps:$4 sm:$0xff]   ;;  %v3721_v5 = vld [vmem:[#allocation10 + $0x1a8] ss:$16 sps:$4 sm:$0xff]   ;;  %v3726_v6 = vld [vmem:[#allocation10 + $0x1c4] ss:$16 sps:$4 sm:$0xff]  }
  0xa2   : > { %1536 = vmatprep.subr.bf16.mxu0 %v3666_v28  ;;  %v3729_v7 = vld [vmem:[#allocation10 + $0x1cc] ss:$16 sps:$4 sm:$0xff]   ;;  %v3724_v8 = vld [vmem:[#allocation10 + $0x1c0] ss:$16 sps:$4 sm:$0xff]   ;;  %v3727_v9 = vld [vmem:[#allocation10 + $0x1c8] ss:$16 sps:$4 sm:$0xff]  }
  0xa3   : > { %1641 = vmatpush1.bf16.msra.mxu1 %v3661_v31  ;;  %v3732_v10 = vld [vmem:[#allocation10 + $0x1e4] ss:$16 sps:$4 sm:$0xff]   ;;  %v3735_v11 = vld [vmem:[#allocation10 + $0x1ec] ss:$16 sps:$4 sm:$0xff]   ;;  %v3730_v12 = vld [vmem:[#allocation10 + $0x1e0] ss:$16 sps:$4 sm:$0xff]  }
  0xa4   : > { %1642 = vmatprep.subr.bf16.mxu1 %v3669_v33  ;;  %v3733_v13 = vld [vmem:[#allocation10 + $0x1e8] ss:$16 sps:$4 sm:$0xff]   ;;  %v3738_v14 = vld [vmem:[#allocation10 + $0x204] ss:$16 sps:$4 sm:$0xff]   ;;  %v3741_v15 = vld [vmem:[#allocation10 + $0x20c] ss:$16 sps:$4 sm:$0xff]  }
  0xa5   : > { %1537 = vmatpush1.bf16.msra.mxu0 %v3664_v30  ;;  %v4470_v17 = vshrl.u32 %v531_v16, 7  ;;  %v529_v19 = vld [vmem:[%s4689_s2] sm:$0xf]  ;;  %s4691_s8 = sld [smem:[#allocation24_spill]]  ;;  %s4692_s30 = sld [smem:[#allocation25_spill]] }
  0xa6   : > { %1538 = vmatprep.subr.bf16.mxu0 %v3672_v32  ;;  %s3461_s14 = sshll.u32 %s4170_s22, 4 }
  0xa7   : > { %1643 = vmatpush1.bf16.msra.mxu1 %v3667_v35  ;;  %v4473_v18 = vsub.s32 0, %v4470_v17  ;;  %v4479_v20 = vsub.s32 1, %v4470_v17  ;;  %v4484_v23 = vsub.s32 2, %v4470_v17  ;;  %v4487_v24 = vsub.s32 3, %v4470_v17  ;;  %s4563_s26 = sadd.s32 16, %s3461_s14 }
  0xa8   : > { %1644 = vmatprep.subr.bf16.mxu1 %v3675_v37  ;;  %p3455_p13 = scmp.gt.s32.totalorder %s4563_s26, 24 }
  0xa9   : > { %1539 = vmatpush1.bf16.msra.mxu0 %v3670_v34  ;;  %v534_v21 = vrot.slane %v529_v19, %v4473_v18  ;;  %v538_v22 = vrot.slane %v529_v19, %v4479_v20  ;;  %v4490_v30 = vrot.slane %v529_v19, %v4484_v23  ;;  %v4493_v33 = vrot.slane %v529_v19, %v4487_v24  ;;  %v3748_v19 = vld [vmem:[#allocation10 + $0x240] ss:$16 sps:$4 sm:$0xff]  }
  0xaa   : > { %1540 = vmatprep.subr.bf16.mxu0 %v3678_v36  ;;  %vm2883_vm2 = vcmask (!%p3455_p13), 7168  }
  0xab   : > { %1645 = vmatpush1.bf16.msra.mxu1 %v3673_v39 }
  0xac   : > { %1646 = vmatprep.subr.bf16.mxu1 %v3681_v41 }
  0xad   : > { %1541 = vmatpush1.bf16.msra.mxu0 %v3676_v38 }
  0xae   : > { %1542 = vmatprep.subr.bf16.mxu0 %v3684_v40 }
  0xaf   : > { %1647 = vmatpush1.bf16.msra.mxu1 %v3679_v43  ;;  %v3736_v43 = vld [vmem:[#allocation10 + $0x200] ss:$16 sps:$4 sm:$0xff]  }
  0xb0   : > { %1648 = vmatprep.subr.bf16.mxu1 %v3687_v45 }
  0xb1   : > { %1543 = vmatpush1.bf16.msra.mxu0 %v3682_v42 }
  0xb2   : > { %1544 = vmatprep.subr.bf16.mxu0 %v3690_v44 }
  0xb3   : > { %1649 = vmatpush1.bf16.msra.mxu1 %v3685_v47  ;;  %v3739_v47 = vld [vmem:[#allocation10 + $0x208] ss:$16 sps:$4 sm:$0xff]  }
  0xb4   : > { %1650 = vmatprep.subr.bf16.mxu1 %v3693_v49 }
  0xb5   : > { %1545 = vmatpush1.bf16.msra.mxu0 %v3688_v46 }
  0xb6   : > { %1546 = vmatprep.subr.bf16.mxu0 %v3696_v48 }
  0xb7   : > { %1651 = vmatpush1.bf16.msra.mxu1 %v3691_v51 }
  0xb8   : > { %1652 = vmatprep.subr.bf16.mxu1 %v3699_v52  ;;  %v3744_v52 = vld [vmem:[#allocation10 + $0x224] ss:$16 sps:$4 sm:$0xff]  }
  0xb9   : > { %1547 = vmatpush1.bf16.msra.mxu0 %v3694_v50 }
  0xba   : > { %1548 = vmatprep.subr.bf16.mxu0 %v3702_v53  ;;  %v3747_v53 = vld [vmem:[#allocation10 + $0x22c] ss:$16 sps:$4 sm:$0xff]  }
  0xbb   : > { %1653 = vmatpush1.bf16.msra.mxu1 %v3697_v55 }
  0xbc   : > { %1654 = vmatprep.subr.bf16.mxu1 %v3705_v57 }
  0xbd   : > { %1549 = vmatpush1.bf16.msra.mxu0 %v3700_v54 }
  0xbe   : > { %1550 = vmatprep.subr.bf16.mxu0 %v3708_v56 }
  0xbf   : > { %1655 = vmatpush1.bf16.msra.mxu1 %v3703_v59 }
  0xc0   : > { %1656 = vmatprep.subr.bf16.mxu1 %v3711_v61 }
  0xc1   : > { %1551 = vmatpush1.bf16.msra.mxu0 %v3706_v58 }
  0xc2   : > { %1552 = vmatprep.subr.bf16.mxu0 %v3714_v60 }
  0xc3   : > { %1657 = vmatpush1.bf16.msra.mxu1 %v3709_v63 }
  0xc4   : > { %1658 = vmatprep.subr.bf16.mxu1 %v3717_v1  ;;  %v3742_v1 = vld [vmem:[#allocation10 + $0x220] ss:$16 sps:$4 sm:$0xff]  }
  0xc5   : > { %1553 = vmatpush1.bf16.msra.mxu0 %v3712_v62 }
  0xc6   : > { %1554 = vmatprep.subr.bf16.mxu0 %v3720_v0 }
  0xc7   : > { %1659 = vmatpush1.bf16.msra.mxu1 %v3715_v3 }
  0xc8   : > { %1660 = vmatprep.subr.bf16.mxu1 %v3723_v4 }
  0xc9   : > { %1555 = vmatpush1.bf16.msra.mxu0 %v3718_v2  ;;  %v3745_v2 = vld [vmem:[#allocation10 + $0x228] ss:$16 sps:$4 sm:$0xff]  }
  0xca   : > { %1556 = vmatprep.subr.bf16.mxu0 %v3726_v6  ;;  %v3750_v6 = vld [vmem:[#allocation10 + $0x244] ss:$16 sps:$4 sm:$0xff]  }
  0xcb   : > { %1661 = vmatpush1.bf16.msra.mxu1 %v3721_v5 }
  0xcc   : > { %1662 = vmatprep.subr.bf16.mxu1 %v3729_v7  ;;  %v3753_v7 = vld [vmem:[#allocation10 + $0x24c] ss:$16 sps:$4 sm:$0xff]  }
  0xcd   : > { %1557 = vmatpush1.bf16.msra.mxu0 %v3724_v8 }
  0xce   : > { %1558 = vmatprep.subr.bf16.mxu0 %v3732_v10 }
  0xcf   : > { %1663 = vmatpush1.bf16.msra.mxu1 %v3727_v9 }
  0xd0   : > { %1664 = vmatprep.subr.bf16.mxu1 %v3735_v11 }
  0xd1   : > { %1559 = vmatpush1.bf16.msra.mxu0 %v3730_v12 }
  0xd2   : > { %1581 = vmatprep.subr.bf16.mxu0 %v3738_v14 }
  0xd3   : > { %1665 = vmatpush1.bf16.msra.mxu1 %v3733_v13 }
  0xd4   : > { %1687 = vmatprep.subr.bf16.mxu1 %v3741_v15 }
 0x167   : > { %v642_v25 = vpop.f32.mrb[0].mxu0 }
 0x168   : > { %v643_v26 = vadd.f32 %v642_v25, %v534_v21  ;;  %v644_v27 = vpop.f32.mrb[1].mxu0 }
 0x169   : > { %v645_v28 = vadd.f32 %v644_v27, %v538_v22  ;;  %v646_v29 = vpop.f32.mrb[2].mxu0  ;;  %v695_v37 = vpop.f32.mrb[0].mxu1 }
 0x16a   : > { %v647_v31 = vadd.f32 %v646_v29, %v534_v21  ;;  %v648_v32 = vpop.f32.mrb[3].mxu0  ;;  %v714_v35 = vmax.f32 %v643_v26, 0.0  ;;  %v696_v40 = vadd.f32 %v695_v37, %v4490_v30  ;;  %v697_v41 = vpop.f32.mrb[1].mxu1  ;;  %v3759_v29 = vld [vmem:[#allocation10 + $0x26c] ss:$16 sps:$4 sm:$0xff]  }
 0x16b   : > { %v649_v34 = vadd.f32 %v648_v32, %v538_v22  ;;  %v715_v38 = vmax.f32 %v645_v28, 0.0  ;;  %v698_v44 = vadd.f32 %v697_v41, %v4493_v33  ;;  %v699_v45 = vpop.f32.mrb[2].mxu1  ;;  %v3756_v28 = vld [vmem:[#allocation10 + $0x264] ss:$16 sps:$4 sm:$0xff]   ;;  %v3757_v37 = vld [vmem:[#allocation10 + $0x268] ss:$16 sps:$4 sm:$0xff]  }
 0x16c   : > { %v718_v36 = vmax.f32 %v647_v31, 0.0  ;;  %v716_v49 = vmax.f32 %v696_v40, 0.0  ;;  %v700_v50 = vadd.f32 %v699_v45, %v4490_v30  ;;  %v701_v51 = vpop.f32.mrb[3].mxu1  ;;  %v3763_v41 = vld [vmem:[#allocation10 + $0x288] ss:$16 sps:$4 sm:$0xff]  }
 0x16d   : > { %v719_v39 = vmax.f32 %v649_v34, 0.0  ;;  %v717_v56 = vmax.f32 %v698_v44, 0.0  ;;  %v702_v57 = vadd.f32 %v701_v51, %v4493_v33  ;;  %v3766_v44 = vld [vmem:[#allocation10 + $0x2a0] ss:$16 sps:$4 sm:$0xff]   ;;  %v3769_v45 = vld [vmem:[#allocation10 + $0x2a8] ss:$16 sps:$4 sm:$0xff]  }
 0x16e   : > { %v730_v42 = vpack.c.bf16 %v718_v36, %v714_v35  ;;  %v720_v60 = vmax.f32 %v700_v50, 0.0  ;;  %v3754_v36 = vld [vmem:[#allocation10 + $0x260] ss:$16 sps:$4 sm:$0xff]   ;;  %v3780_v50 = vld [vmem:[#allocation10 + $0x2e4] ss:$16 sps:$4 sm:$0xff]  }
 0x16f   : > { %v731_v46 = vpack.c.bf16 %v719_v39, %v715_v38  ;;  %v652_v48 = vpop.f32.mrb[4].mxu0  ;;  %v721_v0 = vmax.f32 %v702_v57, 0.0  ;;  %v3765_v39 = vld [vmem:[#allocation10 + $0x28c] ss:$16 sps:$4 sm:$0xff]   ;;  %v3787_v57 = vld [vmem:[#allocation10 + $0x308] ss:$16 sps:$4 sm:$0xff]  }
 0x170   : > { %v653_v54 = vadd.f32 %v652_v48, %v534_v21  ;;  %v654_v55 = vpop.f32.mrb[5].mxu0  ;;  %v4499_v5 = vpack.c.bf16 %v720_v60, %v716_v49  ;;  %v3772_v48 = vld [vmem:[#allocation10 + $0x2c0] ss:$16 sps:$4 sm:$0xff]   ;;  %v3775_v49 = vld [vmem:[#allocation10 + $0x2c8] ss:$16 sps:$4 sm:$0xff]  }
 0x171   : > { %1560 = vmatprep.mubr.bf16.mxu0 %v731_v46  ;;  %1666 = vmatprep.mubr.bf16.mxu1 %v731_v46  ;;  %v655_v58 = vadd.f32 %v654_v55, %v538_v22  ;;  %v656_v59 = vpop.f32.mrb[6].mxu0  ;;  %v733_v9 = vpack.c.bf16 %v721_v0, %v717_v56  ;;  %v705_v10 = vpop.f32.mrb[4].mxu1  ;;  %v3774_v46 = vld [vmem:[#allocation10 + $0x2c4] ss:$16 sps:$4 sm:$0xff]   ;;  %v3783_v51 = vld [vmem:[#allocation10 + $0x2ec] ss:$16 sps:$4 sm:$0xff]  }
 0x172   : > { %1561 = vmatmul.mubr.bf16.vlgmr.msra.gmra.mrb[8].mxu0 %v730_v42  ;;  %1667 = vmatmul.mubr.bf16.vlgmr.msra.gmra.mrb[8].mxu1 %v730_v42  ;;  %v722_v61 = vmax.f32 %v653_v54, 0.0  ;;  %v657_v62 = vadd.f32 %v656_v59, %v534_v21  ;;  %v658_v63 = vpop.f32.mrb[7].mxu0  ;;  %v706_v12 = vadd.f32 %v705_v10, %v4490_v30  ;;  %v707_v13 = vpop.f32.mrb[5].mxu1  ;;  %v3751_v21 = vld [vmem:[#allocation10 + $0x248] ss:$16 sps:$4 sm:$0xff]  }
 0x173   : > { %1582 = vmatpush1.bf16.msra.mxu0 %v3736_v43  ;;  %1688 = vmatpush1.bf16.msra.mxu1 %v3739_v47  ;;  %v723_v3 = vmax.f32 %v655_v58, 0.0  ;;  %v659_v4 = vadd.f32 %v658_v63, %v538_v22  ;;  %v708_v15 = vadd.f32 %v707_v13, %v4493_v33  ;;  %v709_v16 = vpop.f32.mrb[6].mxu1  ;;  %v3768_v42 = vld [vmem:[#allocation10 + $0x2a4] ss:$16 sps:$4 sm:$0xff]   ;;  %v3771_v43 = vld [vmem:[#allocation10 + $0x2ac] ss:$16 sps:$4 sm:$0xff]  }
 0x174   : > { %1583 = vmatprep.subr.bf16.mxu0 %v3744_v52  ;;  %1689 = vmatprep.subr.bf16.mxu1 %v3747_v53  ;;  %v726_v8 = vmax.f32 %v657_v62, 0.0  ;;  %v724_v25 = vmax.f32 %v706_v12, 0.0  ;;  %v710_v26 = vadd.f32 %v709_v16, %v4490_v30  ;;  %v711_v27 = vpop.f32.mrb[7].mxu1  ;;  %v3762_v30 = vld [vmem:[#allocation10 + $0x284] ss:$16 sps:$4 sm:$0xff]  }
 0x175   : > { %v727_v11 = vmax.f32 %v659_v4, 0.0  ;;  %v725_v31 = vmax.f32 %v708_v15, 0.0  ;;  %v712_v32 = vadd.f32 %v711_v27, %v4493_v33  ;;  %v3760_v33 = vld [vmem:[#allocation10 + $0x280] ss:$16 sps:$4 sm:$0xff]   ;;  %v3777_v47 = vld [vmem:[#allocation10 + $0x2cc] ss:$16 sps:$4 sm:$0xff]  }
 0x176   : > { %v734_v14 = vpack.c.bf16 %v726_v8, %v722_v61  ;;  %v728_v34 = vmax.f32 %v710_v26, 0.0  ;;  %v3778_v52 = vld [vmem:[#allocation10 + $0x2e0] ss:$16 sps:$4 sm:$0xff]   ;;  %v3781_v53 = vld [vmem:[#allocation10 + $0x2e8] ss:$16 sps:$4 sm:$0xff]  }
 0x177   : > { %1584 = vmatpush1.bf16.msra.mxu0 %v3742_v1  ;;  %1690 = vmatpush1.bf16.msra.mxu1 %v3745_v2  ;;  %v735_v22 = vpack.c.bf16 %v727_v11, %v723_v3  ;;  %v729_v35 = vmax.f32 %v712_v32, 0.0  ;;  %v3786_v54 = vld [vmem:[#allocation10 + $0x304] ss:$16 sps:$4 sm:$0xff]   ;;  %v3789_v55 = vld [vmem:[#allocation10 + $0x30c] ss:$16 sps:$4 sm:$0xff]  }
 0x178   : > { %1585 = vmatprep.subr.bf16.mxu0 %v3750_v6  ;;  %1691 = vmatprep.subr.bf16.mxu1 %v3753_v7  ;;  %v4505_v38 = vpack.c.bf16 %v728_v34, %v724_v25  ;;  %v3784_v56 = vld [vmem:[#allocation10 + $0x300] ss:$16 sps:$4 sm:$0xff]   ;;  %v3792_v58 = vld [vmem:[#allocation10 + $0x324] ss:$16 sps:$4 sm:$0xff]   ;;  %v3795_v59 = vld [vmem:[#allocation10 + $0x32c] ss:$16 sps:$4 sm:$0xff]  }
 0x179   : > { %1570 = vmatprep.mubr.bf16.mxu0 %v735_v22  ;;  %1676 = vmatprep.mubr.bf16.mxu1 %v735_v22  ;;  %v4507_v40 = vpack.c.bf16 %v729_v35, %v725_v31  ;;  %v3790_v60 = vld [vmem:[#allocation10 + $0x320] ss:$16 sps:$4 sm:$0xff]   ;;  %v3793_v61 = vld [vmem:[#allocation10 + $0x328] ss:$16 sps:$4 sm:$0xff]   ;;  %v3798_v62 = vld [vmem:[#allocation10 + $0x344] ss:$16 sps:$4 sm:$0xff]  }
 0x17a   : > { %1571 = vmatmul.mubr.bf16.gmra.mrb[12].mxu0 %v734_v14  ;;  %1677 = vmatmul.mubr.bf16.gmra.mrb[12].mxu1 %v734_v14  ;;  %v3801_v63 = vld [vmem:[#allocation10 + $0x34c] ss:$16 sps:$4 sm:$0xff]   ;;  %v3796_v0 = vld [vmem:[#allocation10 + $0x340] ss:$16 sps:$4 sm:$0xff]   ;;  %v3799_v1 = vld [vmem:[#allocation10 + $0x348] ss:$16 sps:$4 sm:$0xff]  }
 0x17b   : > { %1586 = vmatpush1.bf16.msra.mxu0 %v3748_v19  ;;  %1692 = vmatpush1.bf16.msra.mxu1 %v3751_v21  ;;  %v3804_v2 = vld [vmem:[#allocation10 + $0x364] ss:$16 sps:$4 sm:$0xff]   ;;  %v3807_v3 = vld [vmem:[#allocation10 + $0x36c] ss:$16 sps:$4 sm:$0xff]   ;;  %v3802_v4 = vld [vmem:[#allocation10 + $0x360] ss:$16 sps:$4 sm:$0xff]  }
 0x17c   : > { %1587 = vmatprep.subr.bf16.mxu0 %v3756_v28  ;;  %1693 = vmatprep.subr.bf16.mxu1 %v3759_v29  ;;  %v3805_v6 = vld [vmem:[#allocation10 + $0x368] ss:$16 sps:$4 sm:$0xff]   ;;  %v3810_v7 = vld [vmem:[#allocation10 + $0x384] ss:$16 sps:$4 sm:$0xff]   ;;  %v3813_v8 = vld [vmem:[#allocation10 + $0x38c] ss:$16 sps:$4 sm:$0xff]  }
 0x17d   : > { %1613 = vmatprep.mubr.bf16.mxu0 %v733_v9  ;;  %1719 = vmatprep.mubr.bf16.mxu1 %v733_v9  ;;  %v3808_v9 = vld [vmem:[#allocation10 + $0x380] ss:$16 sps:$4 sm:$0xff]   ;;  %v3811_v10 = vld [vmem:[#allocation10 + $0x388] ss:$16 sps:$4 sm:$0xff]   ;;  %v3816_v11 = vld [vmem:[#allocation10 + $0x3a4] ss:$16 sps:$4 sm:$0xff]  }
 0x17e   : > { %v3819_v12 = vld [vmem:[#allocation10 + $0x3ac] ss:$16 sps:$4 sm:$0xff]   ;;  %v3814_v13 = vld [vmem:[#allocation10 + $0x3a0] ss:$16 sps:$4 sm:$0xff]   ;;  %v3817_v14 = vld [vmem:[#allocation10 + $0x3a8] ss:$16 sps:$4 sm:$0xff]  }
 0x17f   : > { %1588 = vmatpush1.bf16.msra.mxu0 %v3754_v36  ;;  %1694 = vmatpush1.bf16.msra.mxu1 %v3757_v37  ;;  %v3822_v15 = vld [vmem:[#allocation10 + $0x3c4] ss:$16 sps:$4 sm:$0xff]   ;;  %v3825_v16 = vld [vmem:[#allocation10 + $0x3cc] ss:$16 sps:$4 sm:$0xff]   ;;  %v3820_v19 = vld [vmem:[#allocation10 + $0x3c0] ss:$16 sps:$4 sm:$0xff]  }
 0x180   : > { %1589 = vmatprep.subr.bf16.mxu0 %v3762_v30  ;;  %1695 = vmatprep.subr.bf16.mxu1 %v3765_v39  ;;  %v3823_v21 = vld [vmem:[#allocation10 + $0x3c8] ss:$16 sps:$4 sm:$0xff]   ;;  %v3828_v22 = vld [vmem:[#allocation10 + $0x3e4] ss:$16 sps:$4 sm:$0xff]   ;;  %v3831_v25 = vld [vmem:[#allocation10 + $0x3ec] ss:$16 sps:$4 sm:$0xff]  }
 0x181   : > { %v3826_v26 = vld [vmem:[#allocation10 + $0x3e0] ss:$16 sps:$4 sm:$0xff]   ;;  %v3829_v27 = vld [vmem:[#allocation10 + $0x3e8] ss:$16 sps:$4 sm:$0xff]   ;;  %v3834_v28 = vld [vmem:[#allocation11 + $0x4] ss:$16 sps:$4 sm:$0xff]  }
 0x182   : > { %v3837_v29 = vld [vmem:[#allocation11 + $0xc] ss:$16 sps:$4 sm:$0xff]   ;;  %v3832_v31 = vld [vmem:[#allocation11] ss:$16 sps:$4 sm:$0xff]   ;;  %v3835_v32 = vld [vmem:[#allocation11 + $0x8] ss:$16 sps:$4 sm:$0xff]  }
 0x183   : > { %1590 = vmatpush1.bf16.msra.mxu0 %v3760_v33  ;;  %1696 = vmatpush1.bf16.msra.mxu1 %v3763_v41  ;;  %v3840_v34 = vld [vmem:[#allocation11 + $0x24] ss:$16 sps:$4 sm:$0xff]   ;;  %v3843_v35 = vld [vmem:[#allocation11 + $0x2c] ss:$16 sps:$4 sm:$0xff]   ;;  %v3838_v36 = vld [vmem:[#allocation11 + $0x20] ss:$16 sps:$4 sm:$0xff]  }
 0x184   : > { %1591 = vmatprep.subr.bf16.mxu0 %v3768_v42  ;;  %1697 = vmatprep.subr.bf16.mxu1 %v3771_v43  ;;  %v3841_v37 = vld [vmem:[#allocation11 + $0x28] ss:$16 sps:$4 sm:$0xff]   ;;  %v3846_v30 = vld [vmem:[#allocation11 + $0x44] ss:$16 sps:$4 sm:$0xff]   ;;  %v3849_v39 = vld [vmem:[#allocation11 + $0x4c] ss:$16 sps:$4 sm:$0xff]  }
 0x185   : > { %v3844_v33 = vld [vmem:[#allocation11 + $0x40] ss:$16 sps:$4 sm:$0xff]   ;;  %v3847_v41 = vld [vmem:[#allocation11 + $0x48] ss:$16 sps:$4 sm:$0xff]   ;;  %v3852_v42 = vld [vmem:[#allocation11 + $0x64] ss:$16 sps:$4 sm:$0xff]  }
 0x186   : > { %v3853_v43 = vld [vmem:[#allocation11 + $0x68] ss:$16 sps:$4 sm:$0xff]  }
 0x187   : > { %1592 = vmatpush1.bf16.msra.mxu0 %v3766_v44  ;;  %1698 = vmatpush1.bf16.msra.mxu1 %v3769_v45  ;;  %v3858_v44 = vld [vmem:[#allocation11 + $0x84] ss:$16 sps:$4 sm:$0xff]   ;;  %v3861_v45 = vld [vmem:[#allocation11 + $0x8c] ss:$16 sps:$4 sm:$0xff]  }
 0x188   : > { %1593 = vmatprep.subr.bf16.mxu0 %v3774_v46  ;;  %1699 = vmatprep.subr.bf16.mxu1 %v3777_v47  ;;  %v3856_v46 = vld [vmem:[#allocation11 + $0x80] ss:$16 sps:$4 sm:$0xff]   ;;  %v3859_v47 = vld [vmem:[#allocation11 + $0x88] ss:$16 sps:$4 sm:$0xff]  }
 0x18b   : > { %1594 = vmatpush1.bf16.msra.mxu0 %v3772_v48  ;;  %1700 = vmatpush1.bf16.msra.mxu1 %v3775_v49  ;;  %v3864_v48 = vld [vmem:[#allocation11 + $0xa4] ss:$16 sps:$4 sm:$0xff]   ;;  %v3867_v49 = vld [vmem:[#allocation11 + $0xac] ss:$16 sps:$4 sm:$0xff]  }
 0x18c   : > { %1595 = vmatprep.subr.bf16.mxu0 %v3780_v50  ;;  %1701 = vmatprep.subr.bf16.mxu1 %v3783_v51  ;;  %v3862_v50 = vld [vmem:[#allocation11 + $0xa0] ss:$16 sps:$4 sm:$0xff]   ;;  %v3870_v51 = vld [vmem:[#allocation11 + $0xc4] ss:$16 sps:$4 sm:$0xff]  }
 0x18f   : > { %1596 = vmatpush1.bf16.msra.mxu0 %v3778_v52  ;;  %1702 = vmatpush1.bf16.msra.mxu1 %v3781_v53  ;;  %v3873_v52 = vld [vmem:[#allocation11 + $0xcc] ss:$16 sps:$4 sm:$0xff]   ;;  %v3868_v53 = vld [vmem:[#allocation11 + $0xc0] ss:$16 sps:$4 sm:$0xff]  }
 0x190   : > { %1597 = vmatprep.subr.bf16.mxu0 %v3786_v54  ;;  %1703 = vmatprep.subr.bf16.mxu1 %v3789_v55  ;;  %v3871_v54 = vld [vmem:[#allocation11 + $0xc8] ss:$16 sps:$4 sm:$0xff]   ;;  %v3876_v55 = vld [vmem:[#allocation11 + $0xe4] ss:$16 sps:$4 sm:$0xff]  }
 0x193   : > { %1598 = vmatpush1.bf16.msra.mxu0 %v3784_v56  ;;  %1704 = vmatpush1.bf16.msra.mxu1 %v3787_v57  ;;  %v3879_v56 = vld [vmem:[#allocation11 + $0xec] ss:$16 sps:$4 sm:$0xff]   ;;  %v3874_v57 = vld [vmem:[#allocation11 + $0xe0] ss:$16 sps:$4 sm:$0xff]  }
 0x194   : > { %1599 = vmatprep.subr.bf16.mxu0 %v3792_v58  ;;  %1705 = vmatprep.subr.bf16.mxu1 %v3795_v59  ;;  %v3877_v58 = vld [vmem:[#allocation11 + $0xe8] ss:$16 sps:$4 sm:$0xff]   ;;  %v3882_v59 = vld [vmem:[#allocation11 + $0x104] ss:$16 sps:$4 sm:$0xff]  }
 0x197   : > { %1600 = vmatpush1.bf16.msra.mxu0 %v3790_v60  ;;  %1706 = vmatpush1.bf16.msra.mxu1 %v3793_v61  ;;  %v3885_v60 = vld [vmem:[#allocation11 + $0x10c] ss:$16 sps:$4 sm:$0xff]   ;;  %v3880_v61 = vld [vmem:[#allocation11 + $0x100] ss:$16 sps:$4 sm:$0xff]  }
 0x198   : > { %1601 = vmatprep.subr.bf16.mxu0 %v3798_v62  ;;  %1707 = vmatprep.subr.bf16.mxu1 %v3801_v63  ;;  %v3883_v62 = vld [vmem:[#allocation11 + $0x108] ss:$16 sps:$4 sm:$0xff]   ;;  %v3888_v63 = vld [vmem:[#allocation11 + $0x124] ss:$16 sps:$4 sm:$0xff]  }
 0x19b   : > { %1602 = vmatpush1.bf16.msra.mxu0 %v3796_v0  ;;  %1708 = vmatpush1.bf16.msra.mxu1 %v3799_v1  ;;  %v3891_v0 = vld [vmem:[#allocation11 + $0x12c] ss:$16 sps:$4 sm:$0xff]   ;;  %v3886_v1 = vld [vmem:[#allocation11 + $0x120] ss:$16 sps:$4 sm:$0xff]  }
 0x19c   : > { %1603 = vmatprep.subr.bf16.mxu0 %v3804_v2  ;;  %1709 = vmatprep.subr.bf16.mxu1 %v3807_v3  ;;  %v3889_v2 = vld [vmem:[#allocation11 + $0x128] ss:$16 sps:$4 sm:$0xff]   ;;  %v3894_v3 = vld [vmem:[#allocation11 + $0x144] ss:$16 sps:$4 sm:$0xff]  }
 0x19f   : > { %1604 = vmatpush1.bf16.msra.mxu0 %v3802_v4  ;;  %1710 = vmatpush1.bf16.msra.mxu1 %v3805_v6  ;;  %v3897_v4 = vld [vmem:[#allocation11 + $0x14c] ss:$16 sps:$4 sm:$0xff]   ;;  %v3892_v6 = vld [vmem:[#allocation11 + $0x140] ss:$16 sps:$4 sm:$0xff]  }
 0x1a0   : > { %1605 = vmatprep.subr.bf16.mxu0 %v3810_v7  ;;  %1711 = vmatprep.subr.bf16.mxu1 %v3813_v8  ;;  %v3895_v7 = vld [vmem:[#allocation11 + $0x148] ss:$16 sps:$4 sm:$0xff]   ;;  %v3900_v8 = vld [vmem:[#allocation11 + $0x164] ss:$16 sps:$4 sm:$0xff]  }
 0x1a3   : > { %1606 = vmatpush1.bf16.msra.mxu0 %v3808_v9  ;;  %1712 = vmatpush1.bf16.msra.mxu1 %v3811_v10  ;;  %v3903_v9 = vld [vmem:[#allocation11 + $0x16c] ss:$16 sps:$4 sm:$0xff]   ;;  %v3898_v10 = vld [vmem:[#allocation11 + $0x160] ss:$16 sps:$4 sm:$0xff]  }
 0x1a4   : > { %1607 = vmatprep.subr.bf16.mxu0 %v3816_v11  ;;  %1713 = vmatprep.subr.bf16.mxu1 %v3819_v12  ;;  %v3901_v11 = vld [vmem:[#allocation11 + $0x168] ss:$16 sps:$4 sm:$0xff]   ;;  %v3906_v12 = vld [vmem:[#allocation11 + $0x184] ss:$16 sps:$4 sm:$0xff]  }
 0x1a7   : > { %1608 = vmatpush1.bf16.msra.mxu0 %v3814_v13  ;;  %1714 = vmatpush1.bf16.msra.mxu1 %v3817_v14  ;;  %v3909_v13 = vld [vmem:[#allocation11 + $0x18c] ss:$16 sps:$4 sm:$0xff]   ;;  %v3904_v14 = vld [vmem:[#allocation11 + $0x180] ss:$16 sps:$4 sm:$0xff]  }
 0x1a8   : > { %1609 = vmatprep.subr.bf16.mxu0 %v3822_v15  ;;  %1715 = vmatprep.subr.bf16.mxu1 %v3825_v16  ;;  %v3907_v15 = vld [vmem:[#allocation11 + $0x188] ss:$16 sps:$4 sm:$0xff]   ;;  %v3912_v16 = vld [vmem:[#allocation11 + $0x1a4] ss:$16 sps:$4 sm:$0xff]  }
 0x1ab   : > { %1610 = vmatpush1.bf16.msra.mxu0 %v3820_v19  ;;  %1716 = vmatpush1.bf16.msra.mxu1 %v3823_v21  ;;  %v3915_v19 = vld [vmem:[#allocation11 + $0x1ac] ss:$16 sps:$4 sm:$0xff]   ;;  %v3910_v21 = vld [vmem:[#allocation11 + $0x1a0] ss:$16 sps:$4 sm:$0xff]  }
 0x1ac   : > { %1611 = vmatprep.subr.bf16.mxu0 %v3828_v22  ;;  %1717 = vmatprep.subr.bf16.mxu1 %v3831_v25  ;;  %v3913_v22 = vld [vmem:[#allocation11 + $0x1a8] ss:$16 sps:$4 sm:$0xff]   ;;  %v3918_v25 = vld [vmem:[#allocation11 + $0x1c4] ss:$16 sps:$4 sm:$0xff]  }
 0x1af   : > { %1612 = vmatpush1.bf16.msra.mxu0 %v3826_v26  ;;  %1718 = vmatpush1.bf16.msra.mxu1 %v3829_v27  ;;  %v3921_v26 = vld [vmem:[#allocation11 + $0x1cc] ss:$16 sps:$4 sm:$0xff]   ;;  %v3916_v27 = vld [vmem:[#allocation11 + $0x1c0] ss:$16 sps:$4 sm:$0xff]  }
 0x1b0   : > { %2554 = vmatprep.subr.bf16.mxu0 %v3834_v28  ;;  %2660 = vmatprep.subr.bf16.mxu1 %v3837_v29  ;;  %v3919_v28 = vld [vmem:[#allocation11 + $0x1c8] ss:$16 sps:$4 sm:$0xff]   ;;  %v3924_v29 = vld [vmem:[#allocation11 + $0x1e4] ss:$16 sps:$4 sm:$0xff]  }
 0x1b2   : > { %1614 = vmatmul.mubr.bf16.vlgmr.msra.gmra.mrb[8].mxu0 %v4499_v5  ;;  %1720 = vmatmul.mubr.bf16.vlgmr.msra.gmra.mrb[8].mxu1 %v4499_v5  ;;  %v3855_v5 = vld [vmem:[#allocation11 + $0x6c] ss:$16 sps:$4 sm:$0xff]  }
 0x1b3   : > { %1623 = vmatprep.mubr.bf16.mxu0 %v4507_v40  ;;  %1729 = vmatprep.mubr.bf16.mxu1 %v4507_v40  ;;  %v3850_v40 = vld [vmem:[#allocation11 + $0x60] ss:$16 sps:$4 sm:$0xff]  }
 0x1b4   : > { %2555 = vmatpush1.bf16.msra.mxu0 %v3832_v31  ;;  %2661 = vmatpush1.bf16.msra.mxu1 %v3835_v32  ;;  %v3927_v31 = vld [vmem:[#allocation11 + $0x1ec] ss:$16 sps:$4 sm:$0xff]   ;;  %v3922_v32 = vld [vmem:[#allocation11 + $0x1e0] ss:$16 sps:$4 sm:$0xff]  }
 0x1b5   : > { %2556 = vmatprep.subr.bf16.mxu0 %v3840_v34  ;;  %2662 = vmatprep.subr.bf16.mxu1 %v3843_v35  ;;  %v3925_v34 = vld [vmem:[#allocation11 + $0x1e8] ss:$16 sps:$4 sm:$0xff]   ;;  %v3930_v35 = vld [vmem:[#allocation11 + $0x204] ss:$16 sps:$4 sm:$0xff]  }
 0x1b8   : > { %2557 = vmatpush1.bf16.msra.mxu0 %v3838_v36  ;;  %2663 = vmatpush1.bf16.msra.mxu1 %v3841_v37  ;;  %v3933_v36 = vld [vmem:[#allocation11 + $0x20c] ss:$16 sps:$4 sm:$0xff]  }
 0x1b9   : > { %2558 = vmatprep.subr.bf16.mxu0 %v3846_v30  ;;  %2664 = vmatprep.subr.bf16.mxu1 %v3849_v39  ;;  %v866_v37 = vld [vmem:[%s4690_s6] sm:$0xf] }
 0x1ba   : > { %1624 = vmatmul.mubr.bf16.gmra.mrb[12].mxu0 %v4505_v38  ;;  %1730 = vmatmul.mubr.bf16.gmra.mrb[12].mxu1 %v4505_v38  ;;  %v3865_v38 = vld [vmem:[#allocation11 + $0xa8] ss:$16 sps:$4 sm:$0xff]   ;;  %v871_v30 = vrot.slane %v866_v37, %v4473_v18  ;;  %v879_v39 = vrot.slane %v866_v37, %v4484_v23 }
 0x1bc   : > { %2559 = vmatpush1.bf16.msra.mxu0 %v3844_v33  ;;  %2665 = vmatpush1.bf16.msra.mxu1 %v3847_v41  ;;  %v875_v33 = vrot.slane %v866_v37, %v4479_v20  ;;  %v883_v41 = vrot.slane %v866_v37, %v4487_v24 }
 0x1bd   : > { %2560 = vmatprep.subr.bf16.mxu0 %v3852_v42  ;;  %2666 = vmatprep.subr.bf16.mxu1 %v3855_v5 }
 0x1c0   : > { %2561 = vmatpush1.bf16.msra.mxu0 %v3850_v40  ;;  %2667 = vmatpush1.bf16.msra.mxu1 %v3853_v43 }
 0x1c1   : > { %2562 = vmatprep.subr.bf16.mxu0 %v3858_v44  ;;  %2668 = vmatprep.subr.bf16.mxu1 %v3861_v45 }
 0x1c4   : > { %2563 = vmatpush1.bf16.msra.mxu0 %v3856_v46  ;;  %2669 = vmatpush1.bf16.msra.mxu1 %v3859_v47 }
 0x1c5   : > { %2564 = vmatprep.subr.bf16.mxu0 %v3864_v48  ;;  %2670 = vmatprep.subr.bf16.mxu1 %v3867_v49 }
 0x1c8   : > { %2565 = vmatpush1.bf16.msra.mxu0 %v3862_v50  ;;  %2671 = vmatpush1.bf16.msra.mxu1 %v3865_v38 }
 0x1c9   : > { %2566 = vmatprep.subr.bf16.mxu0 %v3870_v51  ;;  %2672 = vmatprep.subr.bf16.mxu1 %v3873_v52 }
 0x1cc   : > { %2567 = vmatpush1.bf16.msra.mxu0 %v3868_v53  ;;  %2673 = vmatpush1.bf16.msra.mxu1 %v3871_v54 }
 0x1cd   : > { %2568 = vmatprep.subr.bf16.mxu0 %v3876_v55  ;;  %2674 = vmatprep.subr.bf16.mxu1 %v3879_v56 }
 0x1d0   : > { %2569 = vmatpush1.bf16.msra.mxu0 %v3874_v57  ;;  %2675 = vmatpush1.bf16.msra.mxu1 %v3877_v58 }
 0x1d1   : > { %2570 = vmatprep.subr.bf16.mxu0 %v3882_v59  ;;  %2676 = vmatprep.subr.bf16.mxu1 %v3885_v60 }
 0x1d4   : > { %2571 = vmatpush1.bf16.msra.mxu0 %v3880_v61  ;;  %2677 = vmatpush1.bf16.msra.mxu1 %v3883_v62 }
 0x1d5   : > { %2572 = vmatprep.subr.bf16.mxu0 %v3888_v63  ;;  %2678 = vmatprep.subr.bf16.mxu1 %v3891_v0 }
 0x1d8   : > { %2573 = vmatpush1.bf16.msra.mxu0 %v3886_v1  ;;  %2679 = vmatpush1.bf16.msra.mxu1 %v3889_v2 }
 0x1d9   : > { %2574 = vmatprep.subr.bf16.mxu0 %v3894_v3  ;;  %2680 = vmatprep.subr.bf16.mxu1 %v3897_v4 }
 0x1dc   : > { %2575 = vmatpush1.bf16.msra.mxu0 %v3892_v6  ;;  %2681 = vmatpush1.bf16.msra.mxu1 %v3895_v7  ;;  %v3928_v6 = vld [vmem:[#allocation11 + $0x200] ss:$16 sps:$4 sm:$0xff]   ;;  %v3931_v7 = vld [vmem:[#allocation11 + $0x208] ss:$16 sps:$4 sm:$0xff]  }
 0x1dd   : > { %2576 = vmatprep.subr.bf16.mxu0 %v3900_v8  ;;  %2682 = vmatprep.subr.bf16.mxu1 %v3903_v9 }
 0x1e0   : > { %2577 = vmatpush1.bf16.msra.mxu0 %v3898_v10  ;;  %2683 = vmatpush1.bf16.msra.mxu1 %v3901_v11 }
 0x1e1   : > { %2578 = vmatprep.subr.bf16.mxu0 %v3906_v12  ;;  %2684 = vmatprep.subr.bf16.mxu1 %v3909_v13  ;;  %v3936_v12 = vld [vmem:[#allocation11 + $0x224] ss:$16 sps:$4 sm:$0xff]   ;;  %v3939_v13 = vld [vmem:[#allocation11 + $0x22c] ss:$16 sps:$4 sm:$0xff]  }
 0x1e4   : > { %2579 = vmatpush1.bf16.msra.mxu0 %v3904_v14  ;;  %2685 = vmatpush1.bf16.msra.mxu1 %v3907_v15 }
 0x1e5   : > { %2580 = vmatprep.subr.bf16.mxu0 %v3912_v16  ;;  %2686 = vmatprep.subr.bf16.mxu1 %v3915_v19 }
 0x1e8   : > { %2581 = vmatpush1.bf16.msra.mxu0 %v3910_v21  ;;  %2687 = vmatpush1.bf16.msra.mxu1 %v3913_v22 }
 0x1e9   : > { %2582 = vmatprep.subr.bf16.mxu0 %v3918_v25  ;;  %2688 = vmatprep.subr.bf16.mxu1 %v3921_v26 }
 0x1ec   : > { %2583 = vmatpush1.bf16.msra.mxu0 %v3916_v27  ;;  %2689 = vmatpush1.bf16.msra.mxu1 %v3919_v28 }
 0x1ed   : > { %2584 = vmatprep.subr.bf16.mxu0 %v3924_v29  ;;  %2690 = vmatprep.subr.bf16.mxu1 %v3927_v31  ;;  %v3934_v29 = vld [vmem:[#allocation11 + $0x220] ss:$16 sps:$4 sm:$0xff]   ;;  %v3937_v31 = vld [vmem:[#allocation11 + $0x228] ss:$16 sps:$4 sm:$0xff]  }
 0x1f0   : > { %2585 = vmatpush1.bf16.msra.mxu0 %v3922_v32  ;;  %2691 = vmatpush1.bf16.msra.mxu1 %v3925_v34  ;;  %v3942_v32 = vld [vmem:[#allocation11 + $0x244] ss:$16 sps:$4 sm:$0xff]  }
 0x1f1   : > { %2607 = vmatprep.subr.bf16.mxu0 %v3930_v35  ;;  %2713 = vmatprep.subr.bf16.mxu1 %v3933_v36 }
 0x285   : > { %v1615_v42 = vpop.f32.mrb[8].mxu0  ;;  %v1721_v5 = vpop.f32.mrb[8].mxu1 }
 0x286   : > { %v3463_v40 = vadd.f32 %v1615_v42, %v871_v30  ;;  %v3471_v43 = vadd.f32 %v1721_v5, %v879_v39  ;;  %v1617_v44 = vpop.f32.mrb[9].mxu0  ;;  %v1723_v45 = vpop.f32.mrb[9].mxu1  ;;  %v3945_v42 = vld [vmem:[#allocation11 + $0x24c] ss:$16 sps:$4 sm:$0xff]  }
 0x287   : > { %v3464_v46 = vadd.f32 %v1617_v44, %v875_v33  ;;  %v3472_v47 = vadd.f32 %v1723_v45, %v883_v41  ;;  %v1619_v48 = vpop.f32.mrb[10].mxu0  ;;  %v1725_v49 = vpop.f32.mrb[10].mxu1  ;;  %v3940_v45 = vld [vmem:[#allocation11 + $0x240] ss:$16 sps:$4 sm:$0xff]  }
 0x288   : > { %v3465_v50 = vadd.f32 %v1619_v48, %v871_v30  ;;  %v3473_v38 = vadd.f32 %v1725_v49, %v879_v39  ;;  %v1621_v51 = vpop.f32.mrb[11].mxu0  ;;  %v1727_v52 = vpop.f32.mrb[11].mxu1  ;;  %v1740_v55 = vmax.f32 %v3463_v40, 0.0  ;;  %v1742_v56 = vmax.f32 %v3471_v43, 0.0  ;;  %v3951_v48 = vld [vmem:[#allocation11 + $0x26c] ss:$16 sps:$4 sm:$0xff]  }
 0x289   : > { %v3466_v53 = vadd.f32 %v1621_v51, %v875_v33  ;;  %v3474_v54 = vadd.f32 %v1727_v52, %v883_v41  ;;  %v1741_v59 = vmax.f32 %v3464_v46, 0.0  ;;  %v1743_v60 = vmax.f32 %v3472_v47, 0.0  ;;  %v3943_v46 = vld [vmem:[#allocation11 + $0x248] ss:$16 sps:$4 sm:$0xff]   ;;  %v3948_v47 = vld [vmem:[#allocation11 + $0x264] ss:$16 sps:$4 sm:$0xff]  }
 0x28a   : > { %v1744_v57 = vmax.f32 %v3465_v50, 0.0  ;;  %v1746_v58 = vmax.f32 %v3473_v38, 0.0  ;;  %v3946_v49 = vld [vmem:[#allocation11 + $0x260] ss:$16 sps:$4 sm:$0xff]   ;;  %v3949_v50 = vld [vmem:[#allocation11 + $0x268] ss:$16 sps:$4 sm:$0xff]  }
 0x28b   : > { %v1745_v61 = vmax.f32 %v3466_v53, 0.0  ;;  %v1747_v62 = vmax.f32 %v3474_v54, 0.0  ;;  %v3954_v38 = vld [vmem:[#allocation11 + $0x284] ss:$16 sps:$4 sm:$0xff]   ;;  %v3957_v51 = vld [vmem:[#allocation11 + $0x28c] ss:$16 sps:$4 sm:$0xff]  }
 0x28c   : > { %v1756_v63 = vpack.c.bf16 %v1744_v57, %v1740_v55  ;;  %v4522_v0 = vpack.c.bf16 %v1746_v58, %v1742_v56  ;;  %v3952_v52 = vld [vmem:[#allocation11 + $0x280] ss:$16 sps:$4 sm:$0xff]   ;;  %v3955_v53 = vld [vmem:[#allocation11 + $0x288] ss:$16 sps:$4 sm:$0xff]   ;;  %v3960_v54 = vld [vmem:[#allocation11 + $0x2a4] ss:$16 sps:$4 sm:$0xff]  }
 0x28d   : > { %v1757_v1 = vpack.c.bf16 %v1745_v61, %v1741_v59  ;;  %v1759_v2 = vpack.c.bf16 %v1747_v62, %v1743_v60  ;;  %v1625_v3 = vpop.f32.mrb[12].mxu0  ;;  %v1731_v4 = vpop.f32.mrb[12].mxu1  ;;  %v3963_v55 = vld [vmem:[#allocation11 + $0x2ac] ss:$16 sps:$4 sm:$0xff]   ;;  %v3958_v56 = vld [vmem:[#allocation11 + $0x2a0] ss:$16 sps:$4 sm:$0xff]  }
 0x28e   : > { %v3467_v8 = vadd.f32 %v1625_v3, %v871_v30  ;;  %v3475_v9 = vadd.f32 %v1731_v4, %v879_v39  ;;  %v1627_v10 = vpop.f32.mrb[13].mxu0  ;;  %v1733_v11 = vpop.f32.mrb[13].mxu1  ;;  %v3961_v57 = vld [vmem:[#allocation11 + $0x2a8] ss:$16 sps:$4 sm:$0xff]   ;;  %v3966_v58 = vld [vmem:[#allocation11 + $0x2c4] ss:$16 sps:$4 sm:$0xff]  }
 0x28f   : > { %v3468_v14 = vadd.f32 %v1627_v10, %v875_v33  ;;  %v3476_v15 = vadd.f32 %v1733_v11, %v883_v41  ;;  %v1629_v16 = vpop.f32.mrb[14].mxu0  ;;  %v1735_v19 = vpop.f32.mrb[14].mxu1  ;;  %2586 = vmatprep.mubr.bf16.mxu0 %v1757_v1  ;;  %2692 = vmatprep.mubr.bf16.mxu1 %v1757_v1  ;;  %v3969_v59 = vld [vmem:[#allocation11 + $0x2cc] ss:$16 sps:$4 sm:$0xff]   ;;  %v3964_v60 = vld [vmem:[#allocation11 + $0x2c0] ss:$16 sps:$4 sm:$0xff]  }
 0x290   : > { %v3469_v21 = vadd.f32 %v1629_v16, %v871_v30  ;;  %v3477_v22 = vadd.f32 %v1735_v19, %v879_v39  ;;  %v1631_v25 = vpop.f32.mrb[15].mxu0  ;;  %v1737_v26 = vpop.f32.mrb[15].mxu1  ;;  %2587 = vmatmul.mubr.bf16.vlgmr.msra.gmra.mrb[16].mxu0 %v1756_v63  ;;  %2693 = vmatmul.mubr.bf16.vlgmr.msra.gmra.mrb[16].mxu1 %v1756_v63  ;;  %v1748_v34 = vmax.f32 %v3467_v8, 0.0  ;;  %v1750_v35 = vmax.f32 %v3475_v9, 0.0  ;;  %v3967_v61 = vld [vmem:[#allocation11 + $0x2c8] ss:$16 sps:$4 sm:$0xff]  }
 0x291   : > { %v3470_v27 = vadd.f32 %v1631_v25, %v875_v33  ;;  %v3478_v28 = vadd.f32 %v1737_v26, %v883_v41  ;;  %2608 = vmatpush1.bf16.msra.mxu0 %v3928_v6  ;;  %2714 = vmatpush1.bf16.msra.mxu1 %v3931_v7  ;;  %v1749_v30 = vmax.f32 %v3468_v14, 0.0  ;;  %v1751_v39 = vmax.f32 %v3476_v15, 0.0  ;;  %v3972_v62 = vld [vmem:[#allocation11 + $0x2e4] ss:$16 sps:$4 sm:$0xff]   ;;  %v3975_v63 = vld [vmem:[#allocation11 + $0x2ec] ss:$16 sps:$4 sm:$0xff]  }
 0x292   : > { %v1752_v36 = vmax.f32 %v3469_v21, 0.0  ;;  %v1754_v37 = vmax.f32 %v3477_v22, 0.0  ;;  %2609 = vmatprep.subr.bf16.mxu0 %v3936_v12  ;;  %2715 = vmatprep.subr.bf16.mxu1 %v3939_v13  ;;  %v3970_v1 = vld [vmem:[#allocation11 + $0x2e0] ss:$16 sps:$4 sm:$0xff]   ;;  %v3978_v3 = vld [vmem:[#allocation11 + $0x304] ss:$16 sps:$4 sm:$0xff]  }
 0x293   : > { %v1753_v5 = vmax.f32 %v3470_v27, 0.0  ;;  %v1755_v40 = vmax.f32 %v3478_v28, 0.0  ;;  %v3981_v4 = vld [vmem:[#allocation11 + $0x30c] ss:$16 sps:$4 sm:$0xff]   ;;  %v3976_v6 = vld [vmem:[#allocation11 + $0x300] ss:$16 sps:$4 sm:$0xff]  }
 0x294   : > { %v1760_v43 = vpack.c.bf16 %v1752_v36, %v1748_v34  ;;  %v4524_v44 = vpack.c.bf16 %v1754_v37, %v1750_v35  ;;  %v3979_v7 = vld [vmem:[#allocation11 + $0x308] ss:$16 sps:$4 sm:$0xff]   ;;  %v3984_v8 = vld [vmem:[#allocation11 + $0x324] ss:$16 sps:$4 sm:$0xff]   ;;  %v3987_v9 = vld [vmem:[#allocation11 + $0x32c] ss:$16 sps:$4 sm:$0xff]  }
 0x295   : > { %v1761_v33 = vpack.c.bf16 %v1753_v5, %v1749_v30  ;;  %v4526_v41 = vpack.c.bf16 %v1755_v40, %v1751_v39  ;;  %2610 = vmatpush1.bf16.msra.mxu0 %v3934_v29  ;;  %2716 = vmatpush1.bf16.msra.mxu1 %v3937_v31  ;;  %v3982_v10 = vld [vmem:[#allocation11 + $0x320] ss:$16 sps:$4 sm:$0xff]   ;;  %v3985_v11 = vld [vmem:[#allocation11 + $0x328] ss:$16 sps:$4 sm:$0xff]   ;;  %v3990_v12 = vld [vmem:[#allocation11 + $0x344] ss:$16 sps:$4 sm:$0xff]  }
 0x296   : > { %2611 = vmatprep.subr.bf16.mxu0 %v3942_v32  ;;  %2717 = vmatprep.subr.bf16.mxu1 %v3945_v42  ;;  %v3993_v13 = vld [vmem:[#allocation11 + $0x34c] ss:$16 sps:$4 sm:$0xff]   ;;  %v3988_v14 = vld [vmem:[#allocation11 + $0x340] ss:$16 sps:$4 sm:$0xff]   ;;  %v3991_v15 = vld [vmem:[#allocation11 + $0x348] ss:$16 sps:$4 sm:$0xff]  }
 0x297   : > { %2596 = vmatprep.mubr.bf16.mxu0 %v1761_v33  ;;  %2702 = vmatprep.mubr.bf16.mxu1 %v1761_v33  ;;  %v3996_v16 = vld [vmem:[#allocation11 + $0x364] ss:$16 sps:$4 sm:$0xff]   ;;  %v3999_v19 = vld [vmem:[#allocation11 + $0x36c] ss:$16 sps:$4 sm:$0xff]   ;;  %v3994_v21 = vld [vmem:[#allocation11 + $0x360] ss:$16 sps:$4 sm:$0xff]  }
 0x298   : > { %2597 = vmatmul.mubr.bf16.gmra.mrb[20].mxu0 %v1760_v43  ;;  %2703 = vmatmul.mubr.bf16.gmra.mrb[20].mxu1 %v1760_v43  ;;  %v3997_v22 = vld [vmem:[#allocation11 + $0x368] ss:$16 sps:$4 sm:$0xff]   ;;  %v4002_v25 = vld [vmem:[#allocation11 + $0x384] ss:$16 sps:$4 sm:$0xff]   ;;  %v4005_v26 = vld [vmem:[#allocation11 + $0x38c] ss:$16 sps:$4 sm:$0xff]  }
 0x299   : > { %2612 = vmatpush1.bf16.msra.mxu0 %v3940_v45  ;;  %2718 = vmatpush1.bf16.msra.mxu1 %v3943_v46  ;;  %v4000_v27 = vld [vmem:[#allocation11 + $0x380] ss:$16 sps:$4 sm:$0xff]   ;;  %v4003_v28 = vld [vmem:[#allocation11 + $0x388] ss:$16 sps:$4 sm:$0xff]   ;;  %v4008_v29 = vld [vmem:[#allocation11 + $0x3a4] ss:$16 sps:$4 sm:$0xff]  }
 0x29a   : > { %2639 = vmatprep.mubr.bf16.mxu0 %v1759_v2  ;;  %2745 = vmatprep.mubr.bf16.mxu1 %v1759_v2  ;;  %v3973_v2 = vld [vmem:[#allocation11 + $0x2e8] ss:$16 sps:$4 sm:$0xff]   ;;  %v4011_v31 = vld [vmem:[#allocation11 + $0x3ac] ss:$16 sps:$4 sm:$0xff]   ;;  %v4006_v32 = vld [vmem:[#allocation11 + $0x3a0] ss:$16 sps:$4 sm:$0xff]  }
 0x29b   : > { %2613 = vmatprep.subr.bf16.mxu0 %v3948_v47  ;;  %2719 = vmatprep.subr.bf16.mxu1 %v3951_v48  ;;  %v4009_v34 = vld [vmem:[#allocation11 + $0x3a8] ss:$16 sps:$4 sm:$0xff]   ;;  %v4014_v35 = vld [vmem:[#allocation11 + $0x3c4] ss:$16 sps:$4 sm:$0xff]   ;;  %v4017_v36 = vld [vmem:[#allocation11 + $0x3cc] ss:$16 sps:$4 sm:$0xff]  }
 0x29c   : > { %v4012_v37 = vld [vmem:[#allocation11 + $0x3c0] ss:$16 sps:$4 sm:$0xff]   ;;  %v4015_v42 = vld [vmem:[#allocation11 + $0x3c8] ss:$16 sps:$4 sm:$0xff]   ;;  %v4020_v30 = vld [vmem:[#allocation11 + $0x3e4] ss:$16 sps:$4 sm:$0xff]  }
 0x29d   : > { %2614 = vmatpush1.bf16.msra.mxu0 %v3946_v49  ;;  %2720 = vmatpush1.bf16.msra.mxu1 %v3949_v50  ;;  %v4023_v39 = vld [vmem:[#allocation11 + $0x3ec] ss:$16 sps:$4 sm:$0xff]   ;;  %v4018_v5 = vld [vmem:[#allocation11 + $0x3e0] ss:$16 sps:$4 sm:$0xff]   ;;  %v4021_v40 = vld [vmem:[#allocation11 + $0x3e8] ss:$16 sps:$4 sm:$0xff]  }
 0x29e   : > { %2615 = vmatprep.subr.bf16.mxu0 %v3954_v38  ;;  %2721 = vmatprep.subr.bf16.mxu1 %v3957_v51  ;;  %v1892_v43 = vld [vmem:[%s4691_s8] sm:$0xf] }
 0x29f   : > { %v1897_v33 = vrot.slane %v1892_v43, %v4473_v18  ;;  %v1905_v45 = vrot.slane %v1892_v43, %v4484_v23  ;;  %v1901_v46 = vrot.slane %v1892_v43, %v4479_v20 }
 0x2a1   : > { %2616 = vmatpush1.bf16.msra.mxu0 %v3952_v52  ;;  %2722 = vmatpush1.bf16.msra.mxu1 %v3955_v53 }
 0x2a2   : > { %2617 = vmatprep.subr.bf16.mxu0 %v3960_v54  ;;  %2723 = vmatprep.subr.bf16.mxu1 %v3963_v55 }
 0x2a5   : > { %2618 = vmatpush1.bf16.msra.mxu0 %v3958_v56  ;;  %2724 = vmatpush1.bf16.msra.mxu1 %v3961_v57 }
 0x2a6   : > { %2619 = vmatprep.subr.bf16.mxu0 %v3966_v58  ;;  %2725 = vmatprep.subr.bf16.mxu1 %v3969_v59 }
 0x2a9   : > { %2620 = vmatpush1.bf16.msra.mxu0 %v3964_v60  ;;  %2726 = vmatpush1.bf16.msra.mxu1 %v3967_v61 }
 0x2aa   : > { %2621 = vmatprep.subr.bf16.mxu0 %v3972_v62  ;;  %2727 = vmatprep.subr.bf16.mxu1 %v3975_v63  ;;  %v2806_v63 = vld [vmem:[%s4692_s30] sm:$0xf] }
 0x2ad   : > { %2622 = vmatpush1.bf16.msra.mxu0 %v3970_v1  ;;  %2728 = vmatpush1.bf16.msra.mxu1 %v3973_v2 }
 0x2ae   : > { %2623 = vmatprep.subr.bf16.mxu0 %v3978_v3  ;;  %2729 = vmatprep.subr.bf16.mxu1 %v3981_v4 }
 0x2b1   : > { %2624 = vmatpush1.bf16.msra.mxu0 %v3976_v6  ;;  %2730 = vmatpush1.bf16.msra.mxu1 %v3979_v7 }
 0x2b2   : > { %2625 = vmatprep.subr.bf16.mxu0 %v3984_v8  ;;  %2731 = vmatprep.subr.bf16.mxu1 %v3987_v9  ;;  %v2811_v9 = vrot.slane %v2806_v63, %v4473_v18 }
 0x2b5   : > { %2626 = vmatpush1.bf16.msra.mxu0 %v3982_v10  ;;  %2732 = vmatpush1.bf16.msra.mxu1 %v3985_v11  ;;  %v4546_v11 = vrot.slane %v2806_v63, %v4479_v20 }
 0x2b6   : > { %2627 = vmatprep.subr.bf16.mxu0 %v3990_v12  ;;  %2733 = vmatprep.subr.bf16.mxu1 %v3993_v13 }
 0x2b9   : > { %2628 = vmatpush1.bf16.msra.mxu0 %v3988_v14  ;;  %2734 = vmatpush1.bf16.msra.mxu1 %v3991_v15 }
 0x2ba   : > { %2629 = vmatprep.subr.bf16.mxu0 %v3996_v16  ;;  %2735 = vmatprep.subr.bf16.mxu1 %v3999_v19 }
 0x2bd   : > { %2630 = vmatpush1.bf16.msra.mxu0 %v3994_v21  ;;  %2736 = vmatpush1.bf16.msra.mxu1 %v3997_v22  ;;  %v2819_v22 = vrot.slane %v2806_v63, %v4484_v23 }
 0x2be   : > { %2631 = vmatprep.subr.bf16.mxu0 %v4002_v25  ;;  %2737 = vmatprep.subr.bf16.mxu1 %v4005_v26  ;;  %v4550_v25 = vrot.slane %v2806_v63, %v4487_v24 }
 0x2c1   : > { %2632 = vmatpush1.bf16.msra.mxu0 %v4000_v27  ;;  %2738 = vmatpush1.bf16.msra.mxu1 %v4003_v28 }
 0x2c2   : > { %2633 = vmatprep.subr.bf16.mxu0 %v4008_v29  ;;  %2739 = vmatprep.subr.bf16.mxu1 %v4011_v31 }
 0x2c5   : > { %2634 = vmatpush1.bf16.msra.mxu0 %v4006_v32  ;;  %2740 = vmatpush1.bf16.msra.mxu1 %v4009_v34 }
 0x2c6   : > { %2635 = vmatprep.subr.bf16.mxu0 %v4014_v35  ;;  %2741 = vmatprep.subr.bf16.mxu1 %v4017_v36 }
 0x2c9   : > { %2636 = vmatpush1.bf16.msra.mxu0 %v4012_v37  ;;  %2742 = vmatpush1.bf16.msra.mxu1 %v4015_v42 }
 0x2ca   : > { %2637 = vmatprep.subr.bf16.mxu0 %v4020_v30  ;;  %2743 = vmatprep.subr.bf16.mxu1 %v4023_v39 }
 0x2cd   : > { %2638 = vmatpush1.bf16.msra.mxu0 %v4018_v5  ;;  %2744 = vmatpush1.bf16.msra.mxu1 %v4021_v40 }
 0x2d0   : > { %2640 = vmatmul.mubr.bf16.vlgmr.msra.gmra.mrb[16].mxu0 %v4522_v0  ;;  %2746 = vmatmul.mubr.bf16.vlgmr.msra.gmra.mrb[16].mxu1 %v4522_v0  ;;  %v1909_v0 = vrot.slane %v1892_v43, %v4487_v24 }
 0x2d1   : > { %2649 = vmatprep.mubr.bf16.mxu0 %v4526_v41  ;;  %2755 = vmatprep.mubr.bf16.mxu1 %v4526_v41 }
 0x2d8   : > { %2650 = vmatmul.mubr.bf16.gmra.mrb[20].mxu0 %v4524_v44  ;;  %2756 = vmatmul.mubr.bf16.gmra.mrb[20].mxu1 %v4524_v44 }
 0x3a3   : > { %v2641_v47 = vpop.f32.mrb[16].mxu0  ;;  %v2747_v48 = vpop.f32.mrb[16].mxu1 }
 0x3a4   : > { %v3479_v49 = vadd.f32 %v2641_v47, %v1897_v33  ;;  %v3487_v41 = vadd.f32 %v2747_v48, %v1905_v45  ;;  %v2643_v50 = vpop.f32.mrb[17].mxu0  ;;  %v2749_v38 = vpop.f32.mrb[17].mxu1 }
 0x3a5   : > { %v3480_v51 = vadd.f32 %v2643_v50, %v1901_v46  ;;  %v3488_v44 = vadd.f32 %v2749_v38, %v1909_v0  ;;  %v2645_v52 = vpop.f32.mrb[18].mxu0  ;;  %v2751_v53 = vpop.f32.mrb[18].mxu1 }
 0x3a6   : > { %v3481_v54 = vadd.f32 %v2645_v52, %v1897_v33  ;;  %v3489_v55 = vadd.f32 %v2751_v53, %v1905_v45  ;;  %v2647_v56 = vpop.f32.mrb[19].mxu0  ;;  %v2753_v57 = vpop.f32.mrb[19].mxu1  ;;  %v2766_v60 = vmax.f32 %v3479_v49, 0.0  ;;  %v2768_v61 = vmax.f32 %v3487_v41, 0.0 }
 0x3a7   : > { %v3482_v58 = vadd.f32 %v2647_v56, %v1901_v46  ;;  %v3490_v59 = vadd.f32 %v2753_v57, %v1909_v0  ;;  %v2767_v2 = vmax.f32 %v3480_v51, 0.0  ;;  %v2769_v3 = vmax.f32 %v3488_v44, 0.0 }
 0x3a8   : > { %v2770_v62 = vmax.f32 %v3481_v54, 0.0  ;;  %v2772_v1 = vmax.f32 %v3489_v55, 0.0 }
 0x3a9   : > { %v2771_v4 = vmax.f32 %v3482_v58, 0.0  ;;  %v2773_v6 = vmax.f32 %v3490_v59, 0.0 }
 0x3aa   : > { %v2782_v7 = vpack.c.bf16 %v2770_v62, %v2766_v60  ;;  %v2784_v8 = vpack.c.bf16 %v2772_v1, %v2768_v61 }
 0x3ab   : > { %v2783_v10 = vpack.c.bf16 %v2771_v4, %v2767_v2  ;;  %v2785_v12 = vpack.c.bf16 %v2773_v6, %v2769_v3  ;;  %v2651_v13 = vpop.f32.mrb[20].mxu0  ;;  %v2757_v14 = vpop.f32.mrb[20].mxu1 }
 0x3ac   : > { %v2790_v15 = vunpack.c.l.bf16 %v2782_v7  ;;  %v2794_v16 = vunpack.c.h.bf16 %v2782_v7  ;;  %v2653_v19 = vpop.f32.mrb[21].mxu0  ;;  %v2759_v21 = vpop.f32.mrb[21].mxu1  ;;  %v2792_v26 = vunpack.c.l.bf16 %v2784_v8  ;;  %v2796_v27 = vunpack.c.h.bf16 %v2784_v8 }
 0x3ad   : > { %v2795_v28 = vunpack.c.h.bf16 %v2783_v10  ;;  %v3483_v29 = vadd.f32 %v2651_v13, %v1897_v33  ;;  %v2655_v31 = vpop.f32.mrb[22].mxu0  ;;  %v2761_v32 = vpop.f32.mrb[22].mxu1  ;;  %v2791_v20 = vunpack.c.l.bf16 %v2783_v10  ;;  %v2797_v34 = vunpack.c.h.bf16 %v2785_v12 }
 0x3ae   : > { %v3491_v35 = vadd.f32 %v2757_v14, %v1905_v45  ;;  %v3484_v36 = vadd.f32 %v2653_v19, %v1901_v46  ;;  %v2657_v37 = vpop.f32.mrb[23].mxu0  ;;  %v2763_v42 = vpop.f32.mrb[23].mxu1  ;;  %v2832_v30 = vmul.f32 %v2811_v9, %v2794_v16  ;;  %v3492_v39 = vadd.f32 %v2759_v21, %v1909_v0 }
 0x3af   : > { %v3485_v5 = vadd.f32 %v2655_v31, %v1897_v33  ;;  %v3493_v40 = vadd.f32 %v2761_v32, %v1905_v45  ;;  %v2833_v23 = vmul.f32 %v4546_v11, %v2795_v28  ;;  %v2774_v24 = vmax.f32 %v3483_v29, 0.0 }
 0x3b0   : > { %v2776_v43 = vmax.f32 %v3491_v35, 0.0  ;;  %v3486_v47 = vadd.f32 %v2657_v37, %v1901_v46  ;;  %v3494_v41 = vadd.f32 %v2763_v42, %v1909_v0  ;;  %v2793_v50 = vunpack.c.l.bf16 %v2785_v12 }
 0x3b1   : > { %v2778_v48 = vmax.f32 %v3485_v5, 0.0  ;;  %v2780_v49 = vmax.f32 %v3493_v40, 0.0  ;;  %v2775_v38 = vmax.f32 %v3484_v36, 0.0  ;;  %v2828_v44 = vmul.f32 %v2811_v9, %v2790_v15 }
 0x3b2   : > { %v2779_v51 = vmax.f32 %v3486_v47, 0.0  ;;  %v2829_v52 = vmul.f32 %v4546_v11, %v2791_v20  ;;  %v2777_v53 = vmax.f32 %v3492_v39, 0.0  ;;  %v2781_v56 = vmax.f32 %v3494_v41, 0.0 }
 0x3b3   : > { %v2786_v54 = vpack.c.bf16 %v2778_v48, %v2774_v24  ;;  %v2788_v55 = vpack.c.bf16 %v2780_v49, %v2776_v43  ;;  %v2830_v45 = vmul.f32 %v2819_v22, %v2792_v26  ;;  %v2831_v57 = vmul.f32 %v4550_v25, %v2793_v50 }
 0x3b4   : > { %v2787_v33 = vpack.c.bf16 %v2779_v51, %v2775_v38  ;;  %v2844_v58 = vadd.f32 %v2829_v52, %v2828_v44  ;;  %v2834_v61 = vmul.f32 %v2819_v22, %v2796_v27  ;;  %v2789_v63 = vpack.c.bf16 %v2781_v56, %v2777_v53 }
 0x3b5   : > { %v2798_v59 = vunpack.c.l.bf16 %v2786_v54  ;;  %v2802_v46 = vunpack.c.h.bf16 %v2786_v54  ;;  %v2804_v60 = vunpack.c.h.bf16 %v2788_v55  ;;  %v2800_v3 = vunpack.c.l.bf16 %v2788_v55  ;;  %v2882_v54 = vld [vmem:[#allocation2] sm:$0x1] (!%p3455_p13)  ;;  %v2905_v55 = vld [vmem:[#allocation3] sm:$0x1] (!%p3455_p13) }
 0x3b6   : > { %v2799_v0 = vunpack.c.l.bf16 %v2787_v33  ;;  %v2803_v62 = vunpack.c.h.bf16 %v2787_v33  ;;  %v2845_v1 = vadd.f32 %v2844_v58, %v2830_v45  ;;  %v2849_v4 = vadd.f32 %v2833_v23, %v2832_v30 }
 0x3b7   : > { %v2840_v2 = vmul.f32 %v2811_v9, %v2802_v46  ;;  %v2836_v6 = vmul.f32 %v2811_v9, %v2798_v59  ;;  %v2805_v8 = vunpack.c.h.bf16 %v2789_v63  ;;  %v2835_v12 = vmul.f32 %v4550_v25, %v2797_v34 }
 0x3b8   : > { %v2841_v7 = vmul.f32 %v4546_v11, %v2803_v62  ;;  %v2846_v10 = vadd.f32 %v2845_v1, %v2831_v57  ;;  %v2850_v13 = vadd.f32 %v2849_v4, %v2834_v61  ;;  %v2801_v14 = vunpack.c.l.bf16 %v2789_v63 }
 0x3b9   : > { %v2837_v15 = vmul.f32 %v4546_v11, %v2799_v0  ;;  %v2842_v16 = vmul.f32 %v2819_v22, %v2804_v60  ;;  %v2838_v26 = vmul.f32 %v2819_v22, %v2800_v3  ;;  %v2843_v9 = vmul.f32 %v4550_v25, %v2805_v8  ;;  %v3453_v11 = vld [vmem:[#allocation5] ss:$0 sm:$0xff] }
 0x3ba   : > { %2847 = vadd.xlane.f32.xlu0 %v2846_v10  ;;  %v2859_v19 = vadd.f32 %v2841_v7, %v2840_v2  ;;  %v2851_v21 = vadd.f32 %v2850_v13, %v2835_v12  ;;  %v2839_v29 = vmul.f32 %v4550_v25, %v2801_v14  ;;  %v2919_v12 = vld [vmem:[#allocation4] sm:$0x1] (!%p3455_p13) }
 0x3bb   : > { %v2854_v27 = vadd.f32 %v2837_v15, %v2836_v6 }
 0x3bc   : > { %v2860_v28 = vadd.f32 %v2859_v19, %v2842_v16 }
 0x3bd   : > { %v2855_v31 = vadd.f32 %v2854_v27, %v2838_v26 }
 0x3be   : > { %2852 = vadd.xlane.f32.xlu0 %v2851_v21  ;;  %v2861_v32 = vadd.f32 %v2860_v28, %v2843_v9 }
 0x3bf   : > { %v2856_v20 = vadd.f32 %v2855_v31, %v2839_v29 }
 0x3c1   : > { %2857 = vadd.xlane.f32.xlu1 %v2856_v20 }
 0x3c5   : > { %2862 = vadd.xlane.f32.xlu1 %v2861_v32 }
 0x447   : > { %v2848_v34 = vpop.xlane.xlu0 %2847 }
 0x448   : > { %v4565_v35 = vadd.f32 %v3453_v11, %v2848_v34 }
 0x44a   : > { %v2884_v39 = vsel (!%p3455_p13), %vm2883_vm2, %v4565_v35, 0.0 }
 0x44b   : > { %v2853_v22 = vpop.xlane.xlu0 %2852 }
 0x44c   : > { %v4567_v36 = vadd.f32 %v3453_v11, %v2853_v22 }
 0x44d   : > { %2881 = sbr.rel (%p3455_p13) target bundleno = 1162 (0x48a), region = 80 }
 0x44e   : > { %v2858_v37 = vpop.xlane.xlu1 %2857  ;;  %v2885_v5 = vsel (!%p3455_p13), %vm2883_vm2, %v4567_v36, 0.0 }
 0x44f   : > { %v4569_v42 = vadd.f32 %v3453_v11, %v2858_v37  ;;  %v2886_v24 = vadd.f32 (!%p3455_p13), %v2885_v5, %v2884_v39 }
 0x451   : > { %v2896_v40 = vsel (!%p3455_p13), %vm2883_vm2, %v4569_v42, -inf  ;;  %v2887_v47 = vrot.slane (!%p3455_p13), %v2886_v24, 4 }
 0x452   : > { %v2863_v25 = vpop.xlane.xlu1 %2862 }
 0x453   : > { %v4571_v30 = vadd.f32 %v3453_v11, %v2863_v25  ;;  %v2888_v49 = vadd.f32 (!%p3455_p13), %v2887_v47, %v2886_v24 }
 0x455   : > { %v2897_v23 = vsel %vm2883_vm2, %v4571_v30, -inf  ;;  %v2889_v50 = vrot.slane %v2888_v49, 2 }
 0x456   : > { %v2898_v43 = vmax.f32 %v2896_v40, %v2897_v23 }
 0x457   : > { %v2890_v51 = vadd.f32 %v2889_v50, %v2888_v49 }
 0x458   : > { %v2899_v48 = vrot.slane %v2898_v43, 4 }
 0x459   : > { %v2891_v52 = vrot.slane %v2890_v51, 1 }
 0x45a   : > { %v2900_v41 = vmax.f32 %v2898_v43, %v2899_v48 }
 0x45b   : > { %v2892_v56 = vadd.f32 %v2891_v52, %v2890_v51 }
 0x45c   : > { %v2901_v38 = vrot.slane %v2900_v41, 2 }
 0x45d   : > { %v2893_v45 = vadd.f32 %v2892_v56, %v2882_v54 }
 0x45e   : > { %v2902_v44 = vmax.f32 %v2900_v41, %v2901_v38 }
 0x45f   : > { %2895 = vst.msk [vmem:[#allocation2] sm:$0x1] %vm513_vm0, %v2893_v45 }
 0x460   : > { %v2903_v53 = vrot.slane %v2902_v44, 1 }
 0x462   : > { %v2904_v33 = vmax.f32 %v2902_v44, %v2903_v53 }
 0x464   : > { %v2906_v57 = vmax.f32 %v2905_v55, %v2904_v33 }
 0x466   : > { %v2911_v58 = vrot.slane %v2906_v57, %v4473_v18  ;;  %2935 = vst.msk [vmem:[#allocation3] sm:$0x1] %vm513_vm0, %v2906_v57  ;;  %v2920_v0 = vsub.f32 %v2905_v55, %v2906_v57 }
 0x468   : > { %v2913_v59 = vsub.f32 %v4569_v42, %v2911_v58  ;;  %v2914_v46 = vsub.f32 %v4571_v30, %v2911_v58  ;;  %v2921_v62 = vmul.f32 1.442695, %v2920_v0 }
 0x46a   : > { %v2915_v60 = vmul.f32 1.442695, %v2913_v59  ;;  %v2917_v61 = vmul.f32 1.442695, %v2914_v46 }
 0x46c   : > { %4024 = vpow2.f32 %v2915_v60 }
 0x46d   : > { %4026 = vpow2.f32 %v2917_v61 }
 0x46e   : > { %4028 = vpow2.f32 %v2921_v62 }
 0x476   : > { %v4025_v63 = vpop.eup %4024 }
 0x477   : > { %v4027_v1 = vpop.eup %4026  ;;  %v2924_v2 = vsel %vm2883_vm2, %v4025_v63, 0.0 }
 0x478   : > { %v2925_v3 = vsel %vm2883_vm2, %v4027_v1, 0.0  ;;  %v4029_v10 = vpop.eup %4028 }
 0x479   : > { %v2926_v4 = vadd.f32 %v2925_v3, %v2924_v2  ;;  %v2923_v14 = vmul.f32 %v4029_v10, %v2919_v12 }
 0x47b   : > { %v2927_v6 = vrot.slane %v2926_v4, 4 }
 0x47d   : > { %v2928_v7 = vadd.f32 %v2927_v6, %v2926_v4 }
 0x47f   : > { %v2929_v8 = vrot.slane %v2928_v7, 2 }
 0x481   : > { %v2930_v13 = vadd.f32 %v2929_v8, %v2928_v7 }
 0x483   : > { %v2931_v15 = vrot.slane %v2930_v13, 1 }
 0x485   : > { %v2932_v16 = vadd.f32 %v2931_v15, %v2930_v13 }
 0x487   : > { %v2933_v19 = vadd.f32 %v2932_v16, %v2923_v14 }
 0x489   : > { %2934 = vst.msk [vmem:[#allocation4] sm:$0x1] %vm513_vm0, %v2933_v19 }
 0x48a PF: > { %p3456_p1 = scmp.le.s32.totalorder %s4563_s26, 24 }
 0x48b   : > { %v2942_v21 = vadd.s32 (!%p3456_p1), 8, %v4470_v17  ;;  %v2944_v26 = vstv (!%p3456_p1), %s3461_s14  ;;  %vm2952_vm3 = vcmask (!%p3456_p1), 7168   ;;  %v2949_v48 = vld [vmem:[#allocation2] sm:$0x1] (!%p3456_p1)  ;;  %v2976_v49 = vld [vmem:[#allocation3] sm:$0x1] (!%p3456_p1) }
 0x48c   : > { %2939 = sbr.rel (%p3456_p1) target bundleno = 1223 (0x4c7), region = 84  ;;  %v2945_v27 = vadd.s32 (!%p3456_p1), %v2944_v26, %v4470_v17 }
 0x48d   : > { %v2946_v9 = vadd.s32 (!%p3456_p1), %v2944_v26, %v2942_v21 }
 0x48e   : > { %vm2947_vm4 = vcmp.lt.s32.totalorder (!%p3456_p1), %v2945_v27, 24 }
 0x48f   : > { %vm2948_vm5 = vcmp.lt.s32.totalorder (!%p3456_p1), %v2946_v9, 24  ;;  %v2950_v28 = vsel (!%p3456_p1), %vm2947_vm4, %v4565_v35, 0.0  ;;  %v2965_v29 = vsel (!%p3456_p1), %vm2947_vm4, %v4569_v42, -1e+30 }
 0x490   : > { %v2951_v31 = vsel (!%p3456_p1), %vm2948_vm5, %v4567_v36, 0.0  ;;  %v2953_v32 = vsel (!%p3456_p1), %vm2952_vm3, %v2950_v28, 0.0  ;;  %v2966_v20 = vsel (!%p3456_p1), %vm2948_vm5, %v4571_v30, -1e+30  ;;  %v2967_v17 = vsel (!%p3456_p1), %vm2952_vm3, %v2965_v29, -inf }
 0x491   : > { %v2954_v11 = vsel (!%p3456_p1), %vm2952_vm3, %v2951_v31, 0.0  ;;  %v2968_v34 = vsel (!%p3456_p1), %vm2952_vm3, %v2966_v20, -inf  ;;  %v2992_v62 = vld [vmem:[#allocation4] sm:$0x1] (!%p3456_p1) }
 0x492   : > { %v2955_v22 = vadd.f32 (!%p3456_p1), %v2954_v11, %v2953_v32  ;;  %v2969_v37 = vmax.f32 (!%p3456_p1), %v2967_v17, %v2968_v34 }
 0x494   : > { %v2956_v35 = vrot.slane %v2955_v22, 4  ;;  %v2970_v25 = vrot.slane %v2969_v37, 4 }
 0x496   : > { %v2957_v39 = vadd.f32 %v2956_v35, %v2955_v22  ;;  %v2971_v5 = vmax.f32 %v2969_v37, %v2970_v25 }
 0x498   : > { %v2958_v40 = vrot.slane %v2957_v39, 2  ;;  %v2972_v23 = vrot.slane %v2971_v5, 2 }
 0x49a   : > { %v2959_v36 = vadd.f32 %v2958_v40, %v2957_v39  ;;  %v2973_v24 = vmax.f32 %v2971_v5, %v2972_v23 }
 0x49c   : > { %v2960_v43 = vrot.slane %v2959_v36, 1  ;;  %v2974_v47 = vrot.slane %v2973_v24, 1 }
 0x49e   : > { %v2961_v41 = vadd.f32 %v2960_v43, %v2959_v36  ;;  %v2975_v50 = vmax.f32 %v2973_v24, %v2974_v47 }
 0x4a0   : > { %v2962_v38 = vadd.f32 %v2961_v41, %v2949_v48  ;;  %v2977_v51 = vmax.f32 %v2976_v49, %v2975_v50 }
 0x4a2   : > { %2964 = vst.msk [vmem:[#allocation2] sm:$0x1] %vm513_vm0, %v2962_v38  ;;  %v2982_v44 = vrot.slane %v2977_v51, %v4473_v18  ;;  %3008 = vst.msk [vmem:[#allocation3] sm:$0x1] %vm513_vm0, %v2977_v51  ;;  %v2993_v56 = vsub.f32 %v2976_v49, %v2977_v51 }
 0x4a4   : > { %v2984_v52 = vsub.f32 %v4569_v42, %v2982_v44  ;;  %v2985_v53 = vsub.f32 %v4571_v30, %v2982_v44  ;;  %v2994_v33 = vmul.f32 1.442695, %v2993_v56 }
 0x4a6   : > { %v2986_v54 = vmul.f32 1.442695, %v2984_v52  ;;  %v2988_v55 = vmul.f32 1.442695, %v2985_v53 }
 0x4a8   : > { %4030 = vpow2.f32 %v2986_v54 }
 0x4a9   : > { %4032 = vpow2.f32 %v2988_v55 }
 0x4aa   : > { %4034 = vpow2.f32 %v2994_v33 }
 0x4b2   : > { %v4031_v45 = vpop.eup %4030 }
 0x4b3   : > { %v4033_v57 = vpop.eup %4032  ;;  %v2990_v58 = vsel %vm2947_vm4, %v4031_v45, 0.0 }
 0x4b4   : > { %v2991_v59 = vsel %vm2948_vm5, %v4033_v57, 0.0  ;;  %v2997_v18 = vsel %vm2952_vm3, %v2990_v58, 0.0  ;;  %v4035_v0 = vpop.eup %4034 }
 0x4b5   : > { %v2998_v46 = vsel %vm2952_vm3, %v2991_v59, 0.0  ;;  %v2996_v1 = vmul.f32 %v4035_v0, %v2992_v62 }
 0x4b6   : > { %v2999_v42 = vadd.f32 %v2998_v46, %v2997_v18 }
 0x4b8   : > { %v3000_v60 = vrot.slane %v2999_v42, 4 }
 0x4ba   : > { %v3001_v30 = vadd.f32 %v3000_v60, %v2999_v42 }
 0x4bc   : > { %v3002_v61 = vrot.slane %v3001_v30, 2 }
 0x4be   : > { %v3003_v63 = vadd.f32 %v3002_v61, %v3001_v30 }
 0x4c0   : > { %v3004_v2 = vrot.slane %v3003_v63, 1 }
 0x4c2   : > { %v3005_v3 = vadd.f32 %v3004_v2, %v3003_v63 }
 0x4c4   : > { %v3006_v4 = vadd.f32 %v3005_v3, %v2996_v1 }
 0x4c6   : > { %3007 = vst.msk [vmem:[#allocation4] sm:$0x1] %vm513_vm0, %v3006_v4 }
 0x4c7 PF: > { %v3012_v6 = vld [vmem:[#allocation2] sm:$0x1]  ;;  %v3015_v7 = vld [vmem:[#allocation3] sm:$0x1] }
 0x4c8   : > { %3014 = vst.msk [vmem:[%s501_s13] sm:$0x1] %vm513_vm0, %v3012_v6  ;;  %3016 = vst.msk [vmem:[%s504_s7] sm:$0x1] %vm513_vm0, %v3015_v7 }
 0x4cd   : > { %v3017_v8 = vld [vmem:[#allocation4] sm:$0x1] }
 0x4ce   : > { %3018 = vst.msk [vmem:[%s507_s15] sm:$0x1] %vm513_vm0, %v3017_v8 }
 0x4cf PF: > { %s29_s24 = sadd.s32 1, %s4178_s24   ;;  %s4693_s4 = sld [smem:[#allocation20_spill]] }
 0x4d0   : > { %p26_p2 = scmp.ge.s32.totalorder %s29_s24, 4   ;;  %s4694_s13 = sld [smem:[#allocation19_spill]] }
 0x4d1   : > { %s4695_s19 = smov %s4162_s20  ;;  %s4696_s20 = smov %s4166_s21 }
 0x4d2   : > { %s4698_s22 = smov %s4174_s23  ;;  %28 = sbr.rel (!%p26_p2) target bundleno = 12 (0xc), region = 153 }
 0x4d5   : > { %s4697_s21 = smov %s4693_s4 }
 0x4d6   : > { %s4699_s23 = smov %s4694_s13 }
 0x4d9   :  { %3060 = vsyncpa [#allocation7], 1 }
 0x4da   :  { %3062 = vsyncpa [#allocation7 + $0x1], 1 }
 0x4db   :  { %3063 = vsyncpa [#allocation9], 1 }
 0x4dc   :  { %3064 = vsyncpa [#allocation12], 1 }

</bundles_post_ra>
